<compile_context>
chip_gen: v7x
topology: tpu7x:2x2x1
jax: 0.10.0
libtpu: 0.0.40
codegen_flags: <defaults>
</compile_context>

<pallas_src>
import functools

import jax
import jax.numpy as jnp
from jax import lax
from jax.experimental import pallas as pl
from jax.experimental.pallas import tpu as pltpu


def _round_up(n, m):
    return (n + m - 1) // m * m


def _pad_sizes(seq, vocab, emb_dim, cout):
    sel_pad = _round_up(seq * vocab + 1, 128)        # +1 = always-on bias lane
    quad = (seq // 2) * (emb_dim // 2) * cout        # one 2x2-pool quadrant
    quad_pad = _round_up(quad, 128)
    return sel_pad, quad, quad_pad


# ------------------------------ Pallas kernel -------------------------------

def _softmax_cnn_kernel(x_ref, tgt_ref, bigw_ref, smallw_ref, bias_ref, o_ref,
                        *, n_feature, n_half, n_hidden, n_out, pooled_w):
    """Entire SoftMax_CNN forward for one sample; everything VMEM-resident."""
    f32, bf16 = jnp.float32, jnp.bfloat16

    # Static views into the packed slabs (row offsets 8-aligned for this cfg).
    r0, r1 = n_feature, n_feature + n_half
    r2, r3 = r1 + n_hidden, r1 + n_hidden + pooled_w
    sw = smallw_ref[...]                                  # (576, 16) bf16
    w1 = sw[0:r0, 0:n_half]
    w2 = sw[r0:r1, 0:n_hidden]
    wfx = sw[r1:r2, 0:n_out]
    wfc = sw[r2:r3, 0:n_out]
    bv = bias_ref[...]                                    # (1, 34) f32
    b1 = bv[:, 0:n_half]
    b2 = bv[:, n_half:n_half + n_hidden]
    bf = bv[:, n_half + n_hidden:n_half + n_hidden + n_out]

    # ---- MLP branch: hidden -> ReLU -> hidden2 -> sigmoid -------------------
    h1 = jnp.dot(x_ref[...].astype(bf16), w1, preferred_element_type=f32) + b1
    h1 = jnp.maximum(h1, 0.0)
    z2 = jnp.dot(h1.astype(bf16), w2, preferred_element_type=f32) + b2
    h2 = pl.reciprocal(1.0 + jnp.exp(-z2), approx=True)   # sigmoid (EUP slot)

    # ---- Embedding + zero-pad + Conv2d + conv bias as ONE matmul ------------
    # sel is a one-hot over (seq position, vocab) pairs plus an always-on bias
    # lane; bigw is the init-time full 2-D Toeplitz of (emb table x conv w),
    # columns grouped by 2x2-pool quadrant and 128-lane padded.
    lane = lax.broadcasted_iota(jnp.int32, tgt_ref.shape, 1)          # (1, 512)
    sel = jnp.where(lane == tgt_ref[...], 1.0, 0.0).astype(bf16)
    conv = jnp.dot(sel, bigw_ref[...], preferred_element_type=f32)    # (1, 2048)
    conv = jnp.maximum(conv, 0.0)                                     # ReLU

    # ---- MaxPool2d(2) + NCHW flatten: 3 whole-slab, 128-aligned maxima ------
    q0 = conv[:, 0 * pooled_w:1 * pooled_w]
    q1 = conv[:, 1 * pooled_w:2 * pooled_w]
    q2 = conv[:, 2 * pooled_w:3 * pooled_w]
    q3 = conv[:, 3 * pooled_w:4 * pooled_w]
    pooled = jnp.maximum(jnp.maximum(q0, q1), jnp.maximum(q2, q3))    # (1, 512)

    # ---- cat([x, conv_flat]) @ final_out + exact softmax --------------------
    logits = (jnp.dot(h2.astype(bf16), wfx, preferred_element_type=f32)
              + jnp.dot(pooled.astype(bf16), wfc, preferred_element_type=f32)
              + bf)                                                   # (1, n_out)
    m = jnp.max(logits, axis=-1, keepdims=True)
    e = jnp.exp(logits - m)
    o_ref[...] = (e / jnp.sum(e, axis=-1, keepdims=True)).astype(o_ref.dtype)


# --------------------------------- wrapper -----------------------------------

def make_forward(*, n_feature, n_hidden, n_out, vocab, seq, emb_dim, cout=16):
    n_half = n_feature // 2
    sel_pad, _, quad_pad = _pad_sizes(seq, vocab, emb_dim, cout)

    kernel = functools.partial(
        _softmax_cnn_kernel, n_feature=n_feature, n_half=n_half,
        n_hidden=n_hidden, n_out=n_out, pooled_w=quad_pad)
    vmem = pl.BlockSpec(memory_space=pltpu.MemorySpace.VMEM)
    call = pl.pallas_call(
        kernel,
        out_shape=jax.ShapeDtypeStruct((1, n_out), jnp.float32),
        in_specs=[vmem] * 5,
        out_specs=vmem,
    )

    chunk_base = jnp.arange(seq, dtype=jnp.int32) * vocab             # (seq,)
    tail = jnp.concatenate(
        [jnp.array([seq * vocab], jnp.int32),                         # bias lane
         jnp.full((sel_pad - seq * vocab - 1,), -1, jnp.int32)])      # never match

    @jax.jit
    def forward(params, x, word_x):
        # Selector target: lane j of chunk s matches iff j == s*vocab + word[s].
        # Out-of-range word ids never match -> zero embedding row (nn.Embedding
        # would raise instead; inputs are assumed in [0, vocab)).
        widx = word_x.reshape(-1).astype(jnp.int32)
        tgt = jnp.concatenate([jnp.repeat(widx + chunk_base, vocab), tail])
        return call(x, tgt.reshape(1, sel_pad),
                    params["big_w"], params["small_w"], params["bias"])

    return forward


# -------------------- init-time parameter preprocessing ----------------------

def init_params(key, *, n_feature, n_hidden, n_out, vocab, emb_dim, seq,
                ksize=5, cout=16):
    n_half = n_feature // 2
    h2o, w2o = seq // 2, emb_dim // 2
    cnn_out_dim = cout * h2o * w2o
    assert cnn_out_dim == 400, "module declares cnn_out_dim=400 (needs seq=10)"
    pad = ksize // 2
    sel_pad, quad, quad_pad = _pad_sizes(seq, vocab, emb_dim, cout)

    keys = jax.random.split(key, 6)

    def lin(k, fan_in, fan_out):
        kw_, kb_ = jax.random.split(k)
        w = jax.random.normal(kw_, (fan_in, fan_out), jnp.float32) / jnp.sqrt(fan_in)
        b = jax.random.normal(kb_, (fan_out,), jnp.float32) * 0.01
        return w, b

    w1, b1 = lin(keys[0], n_feature, n_half)                 # hidden
    w2, b2 = lin(keys[1], n_half, n_hidden)                  # hidden2
    emb = jax.random.normal(keys[2], (vocab, emb_dim), jnp.float32)
    cw = jax.random.normal(keys[3], (ksize, ksize, cout), jnp.float32) / ksize
    cb = jax.random.normal(keys[4], (cout,), jnp.float32) * 0.01
    wf, bf = lin(keys[5], n_hidden + cnn_out_dim, n_out)     # final_out
    # prelu / out / out_word / conv2..conv4 are unused in forward -> omitted.

    # ---- full 2-D Toeplitz slab: (word v at seq row s) -> conv output -------
    # A[v, kw, w] = emb[v, w + kw - pad]   (0 outside the image width)
    d = jnp.arange(emb_dim)[None, :] + jnp.arange(ksize)[:, None] - pad
    A = jnp.where(((d >= 0) & (d < emb_dim))[None],
                  emb[:, jnp.clip(d, 0, emb_dim - 1)], 0.0)           # (v,KW,W)
    # Bm[v, kh, c, w] = sum_kw cw[kh, kw, c] * A[v, kw, w]
    Bm = jnp.einsum('hkc,vkw->vhcw', cw, A)                           # (v,KH,C,W)
    # T5[s, v, c, h, w] = Bm[v, s-h+pad, c, w] where that tap exists
    kh = jnp.arange(seq)[None, :] - jnp.arange(seq)[:, None] + pad    # [h, s]
    T5 = jnp.where(((kh >= 0) & (kh < ksize))[None, :, :, None, None],
                   Bm[:, jnp.clip(kh, 0, ksize - 1), :, :], 0.0)      # (v,h,s,C,W)
    T5 = jnp.transpose(T5, (2, 0, 3, 1, 4))                           # (s,v,C,H,W)
    # regroup output pixels (c, h, w) -> (q = 2*hp+wp, h2, w2, c) so the 2x2
    # pool becomes a max over four contiguous, 128-aligned lane quadrants.
    T5 = T5.reshape(seq, vocab, cout, h2o, 2, w2o, 2)        # s,v,c,h2,hp,w2,wp
    T6 = jnp.transpose(T5, (0, 1, 4, 6, 3, 5, 2))            # s,v,hp,wp,h2,w2,c
    T6 = T6.reshape(seq * vocab, 4, quad)
    cb_row = jnp.tile(cb, (4, h2o * w2o)).reshape(1, 4, quad)         # conv bias
    rows = jnp.concatenate([T6, cb_row], axis=0)             # (seq*vocab+1,4,quad)
    rows = jnp.pad(rows, ((0, sel_pad - rows.shape[0]), (0, 0),
                          (0, quad_pad - quad)))
    big_w = rows.reshape(sel_pad, 4 * quad_pad).astype(jnp.bfloat16)  # (512,2048)

    # ---- final linear: x-part + conv-part (rows permuted from torch's NCHW
    #      flatten order (c, h2, w2) to the kernel's pooled order (h2, w2, c))
    wfx = wf[:n_hidden]
    jk = jnp.arange(quad)
    h2_, w2_, c_ = jk // (w2o * cout), (jk % (w2o * cout)) // cout, jk % cout
    wfc = wf[n_hidden:][c_ * (h2o * w2o) + h2_ * w2o + w2_]
    wfc = jnp.pad(wfc, ((0, quad_pad - quad), (0, 0)))                # (512, n_out)

    # ---- packed slabs --------------------------------------------------------
    width = max(n_half, n_hidden, n_out)

    def padw(a):
        return jnp.pad(a, ((0, 0), (0, width - a.shape[1])))

    small_w = jnp.concatenate([padw(w1), padw(w2), padw(wfx), padw(wfc)],
                              axis=0).astype(jnp.bfloat16)            # (576, 16)
    bias = jnp.concatenate([b1, b2, bf]).reshape(1, -1).astype(jnp.float32)

    params = dict(big_w=big_w, small_w=small_w, bias=bias)
    raw = dict(w1=w1, b1=b1, w2=w2, b2=b2, emb=emb, cw=cw, cb=cb, wf=wf, bf=bf)
    return params, raw


# -------------------- plain-JAX reference (f32, for validation) --------------

def reference_forward(raw, x, word_x, *, seq, emb_dim, ksize=5):
    h1 = jnp.maximum(x @ raw["w1"] + raw["b1"], 0.0)
    h2 = jax.nn.sigmoid(h1 @ raw["w2"] + raw["b2"])
    img = raw["emb"][word_x.reshape(-1)]                              # (seq, W)
    imgp = jnp.pad(img, ((ksize // 2,) * 2, (ksize // 2,) * 2))
    patches = jnp.stack([imgp[kh:kh + seq, kw:kw + emb_dim]
                         for kh in range(ksize) for kw in range(ksize)])
    conv = (jnp.einsum('khw,kc->chw', patches,
                       raw["cw"].reshape(ksize * ksize, -1))
            + raw["cb"][:, None, None])
    conv = jnp.maximum(conv, 0.0)
    pooled = jnp.max(conv.reshape(-1, seq // 2, 2, emb_dim // 2, 2), axis=(2, 4))
    flat = pooled.reshape(1, -1)                                      # NCHW flatten
    logits = jnp.concatenate([h2, flat], axis=1) @ raw["wf"] + raw["bf"]
    return jax.nn.softmax(logits, axis=1)


# ----------------------------------- main ------------------------------------

if __name__ == "__main__":
    n_feature, n_hidden, n_out, vocb_size = 32, 16, 2, 50
    emb_dim = 10
    # TODO(synk): config.word_max_length is external config; it must be 10 for
    # the module's declared cnn_out_dim=400 / final_out(n_hidden+400, 2) to hold.
    word_max_length = 10
    B = 1   # torch.cat([x, conv.view(1, -1)], dim=1) forces batch 1

    key = jax.random.PRNGKey(0)
    k_param, k_x, k_w = jax.random.split(key, 3)
    params, raw = init_params(k_param, n_feature=n_feature, n_hidden=n_hidden,
                              n_out=n_out, vocab=vocb_size, emb_dim=emb_dim,
                              seq=word_max_length)
    forward = make_forward(n_feature=n_feature, n_hidden=n_hidden, n_out=n_out,
                           vocab=vocb_size, seq=word_max_length, emb_dim=emb_dim)

    x = jax.random.normal(k_x, (B, n_feature), jnp.float32)
    word_x = jax.random.randint(k_w, (B, word_max_length), 0, vocb_size,
                                dtype=jnp.int32)

    out = jax.block_until_ready(forward(params, x, word_x))
    ref = reference_forward(raw, x, word_x, seq=word_max_length, emb_dim=emb_dim)

    assert out.shape == (B, n_out)
    assert bool(jnp.isfinite(out).all())
    assert abs(float(jnp.sum(out)) - 1.0) < 1e-3               # exact softmax
    assert bool(jnp.allclose(out, ref, atol=2.5e-2)), (out, ref)  # bf16 weights
    print("KERNEL_OK")
</pallas_src>

<mosaic_0001>
module attributes {stable_mosaic.version = 11 : i64} {
  func.func @_softmax_cnn_kernel(%arg0: memref<1x32xf32, #tpu.memory_space<vmem>>, %arg1: memref<1x512xi32, #tpu.memory_space<vmem>>, %arg2: memref<512x2048xbf16, #tpu.memory_space<vmem>>, %arg3: memref<576x16xbf16, #tpu.memory_space<vmem>>, %arg4: memref<1x34xf32, #tpu.memory_space<vmem>>, %arg5: memref<1x2xf32, #tpu.memory_space<vmem>>) attributes {dimension_semantics = [], scalar_prefetch = 0 : i64, scratch_operands = 0 : i64, tpu.core_type = #tpu.core_type<tc>} {
    %c0 = arith.constant 0 : index
    %c0_0 = arith.constant 0 : index
    %0 = vector.load %arg3[%c0, %c0_0] : memref<576x16xbf16, #tpu.memory_space<vmem>>, vector<576x16xbf16>
    %1 = vector.extract_strided_slice %0 {offsets = [0, 0], sizes = [32, 16], strides = [1, 1]} : vector<576x16xbf16> to vector<32x16xbf16>
    %2 = vector.extract_strided_slice %0 {offsets = [32, 0], sizes = [16, 16], strides = [1, 1]} : vector<576x16xbf16> to vector<16x16xbf16>
    %3 = vector.extract_strided_slice %0 {offsets = [48, 0], sizes = [16, 2], strides = [1, 1]} : vector<576x16xbf16> to vector<16x2xbf16>
    %4 = vector.extract_strided_slice %0 {offsets = [64, 0], sizes = [512, 2], strides = [1, 1]} : vector<576x16xbf16> to vector<512x2xbf16>
    %c0_1 = arith.constant 0 : index
    %c0_2 = arith.constant 0 : index
    %5 = vector.load %arg4[%c0_1, %c0_2] : memref<1x34xf32, #tpu.memory_space<vmem>>, vector<1x34xf32>
    %6 = vector.extract_strided_slice %5 {offsets = [0, 0], sizes = [1, 16], strides = [1, 1]} : vector<1x34xf32> to vector<1x16xf32>
    %7 = vector.extract_strided_slice %5 {offsets = [0, 16], sizes = [1, 16], strides = [1, 1]} : vector<1x34xf32> to vector<1x16xf32>
    %8 = vector.extract_strided_slice %5 {offsets = [0, 32], sizes = [1, 2], strides = [1, 1]} : vector<1x34xf32> to vector<1x2xf32>
    %c0_3 = arith.constant 0 : index
    %c0_4 = arith.constant 0 : index
    %9 = vector.load %arg0[%c0_3, %c0_4] : memref<1x32xf32, #tpu.memory_space<vmem>>, vector<1x32xf32>
    %10 = arith.truncf %9 : vector<1x32xf32> to vector<1x32xbf16>
    %cst = arith.constant dense<0.000000e+00> : vector<1x16xf32>
    %11 = tpu.matmul %10, %1, %cst {dimension_numbers = #tpu.dot_dimension_numbers<[1], [0], [0], [1], [0, 0, 1, 1], [], []>} : vector<1x32xbf16>, vector<32x16xbf16>, vector<1x16xf32> -> vector<1x16xf32>
    %12 = arith.addf %11, %6 : vector<1x16xf32>
    %cst_5 = arith.constant 0.000000e+00 : f32
    %13 = vector.broadcast %cst_5 : f32 to vector<1x16xf32>
    %14 = arith.maximumf %12, %13 : vector<1x16xf32>
    %15 = arith.truncf %14 : vector<1x16xf32> to vector<1x16xbf16>
    %cst_6 = arith.constant dense<0.000000e+00> : vector<1x16xf32>
    %16 = tpu.matmul %15, %2, %cst_6 {dimension_numbers = #tpu.dot_dimension_numbers<[1], [0], [0], [1], [0, 0, 1, 1], [], []>} : vector<1x16xbf16>, vector<16x16xbf16>, vector<1x16xf32> -> vector<1x16xf32>
    %17 = arith.addf %16, %7 : vector<1x16xf32>
    %cst_7 = arith.constant 0.000000e+00 : f32
    %18 = vector.broadcast %cst_7 : f32 to vector<1x16xf32>
    %19 = arith.subf %18, %17 : vector<1x16xf32>
    %20 = math.exp %19 : vector<1x16xf32>
    %cst_8 = arith.constant 1.000000e+00 : f32
    %21 = vector.broadcast %cst_8 : f32 to vector<1x16xf32>
    %22 = arith.addf %21, %20 : vector<1x16xf32>
    %23 = tpu.reciprocal %22 {approx = true} : vector<1x16xf32> -> vector<1x16xf32>
    %24 = tpu.iota {dimensions = array<i32: 1>} : vector<1x512xi32>
    %c0_9 = arith.constant 0 : index
    %c0_10 = arith.constant 0 : index
    %25 = vector.load %arg1[%c0_9, %c0_10] : memref<1x512xi32, #tpu.memory_space<vmem>>, vector<1x512xi32>
    %26 = arith.cmpi eq, %24, %25 : vector<1x512xi32>
    %cst_11 = arith.constant 1.000000e+00 : f32
    %cst_12 = arith.constant 0.000000e+00 : f32
    %27 = vector.broadcast %cst_11 : f32 to vector<1x512xf32>
    %28 = vector.broadcast %cst_12 : f32 to vector<1x512xf32>
    %29 = arith.select %26, %27, %28 : vector<1x512xi1>, vector<1x512xf32>
    %30 = arith.truncf %29 : vector<1x512xf32> to vector<1x512xbf16>
    %c0_13 = arith.constant 0 : index
    %c0_14 = arith.constant 0 : index
    %31 = vector.load %arg2[%c0_13, %c0_14] : memref<512x2048xbf16, #tpu.memory_space<vmem>>, vector<512x2048xbf16>
    %cst_15 = arith.constant dense<0.000000e+00> : vector<1x2048xf32>
    %32 = tpu.matmul %30, %31, %cst_15 {dimension_numbers = #tpu.dot_dimension_numbers<[1], [0], [0], [1], [0, 0, 1, 1], [], []>} : vector<1x512xbf16>, vector<512x2048xbf16>, vector<1x2048xf32> -> vector<1x2048xf32>
    %cst_16 = arith.constant 0.000000e+00 : f32
    %33 = vector.broadcast %cst_16 : f32 to vector<1x2048xf32>
    %34 = arith.maximumf %32, %33 : vector<1x2048xf32>
    %35 = vector.extract_strided_slice %34 {offsets = [0, 0], sizes = [1, 512], strides = [1, 1]} : vector<1x2048xf32> to vector<1x512xf32>
    %36 = vector.extract_strided_slice %34 {offsets = [0, 512], sizes = [1, 512], strides = [1, 1]} : vector<1x2048xf32> to vector<1x512xf32>
    %37 = vector.extract_strided_slice %34 {offsets = [0, 1024], sizes = [1, 512], strides = [1, 1]} : vector<1x2048xf32> to vector<1x512xf32>
    %38 = vector.extract_strided_slice %34 {offsets = [0, 1536], sizes = [1, 512], strides = [1, 1]} : vector<1x2048xf32> to vector<1x512xf32>
    %39 = arith.maximumf %35, %36 : vector<1x512xf32>
    %40 = arith.maximumf %37, %38 : vector<1x512xf32>
    %41 = arith.maximumf %39, %40 : vector<1x512xf32>
    %42 = arith.truncf %23 : vector<1x16xf32> to vector<1x16xbf16>
    %cst_17 = arith.constant dense<0.000000e+00> : vector<1x2xf32>
    %43 = tpu.matmul %42, %3, %cst_17 {dimension_numbers = #tpu.dot_dimension_numbers<[1], [0], [0], [1], [0, 0, 1, 1], [], []>} : vector<1x16xbf16>, vector<16x2xbf16>, vector<1x2xf32> -> vector<1x2xf32>
    %44 = arith.truncf %41 : vector<1x512xf32> to vector<1x512xbf16>
    %cst_18 = arith.constant dense<0.000000e+00> : vector<1x2xf32>
    %45 = tpu.matmul %44, %4, %cst_18 {dimension_numbers = #tpu.dot_dimension_numbers<[1], [0], [0], [1], [0, 0, 1, 1], [], []>} : vector<1x512xbf16>, vector<512x2xbf16>, vector<1x2xf32> -> vector<1x2xf32>
    %46 = arith.addf %43, %45 : vector<1x2xf32>
    %47 = arith.addf %46, %8 : vector<1x2xf32>
    %cst_19 = arith.constant dense<0xFF800000> : vector<1xf32>
    %48 = vector.multi_reduction <maximumf>, %47, %cst_19 [1] : vector<1x2xf32> to vector<1xf32>
    %49 = vector.shape_cast %48 : vector<1xf32> to vector<1x1xf32>
    %50 = vector.broadcast %49 : vector<1x1xf32> to vector<1x2xf32>
    %51 = arith.subf %47, %50 : vector<1x2xf32>
    %52 = math.exp %51 : vector<1x2xf32>
    %cst_20 = arith.constant dense<0.000000e+00> : vector<1xf32>
    %53 = vector.multi_reduction <add>, %52, %cst_20 [1] : vector<1x2xf32> to vector<1xf32>
    %54 = vector.shape_cast %53 : vector<1xf32> to vector<1x1xf32>
    %55 = vector.broadcast %54 : vector<1x1xf32> to vector<1x2xf32>
    %56 = arith.divf %52, %55 : vector<1x2xf32>
    %c0_21 = arith.constant 0 : index
    %c0_22 = arith.constant 0 : index
    %57 = vector.load %arg5[%c0_21, %c0_22] : memref<1x2xf32, #tpu.memory_space<vmem>>, vector<1x2xf32>
    tpu.vector_store %arg5[%c0_21, %c0_22], %56 {strides = array<i32>} : memref<1x2xf32, #tpu.memory_space<vmem>>, vector<1x2xf32>,
    return
  }
}

</mosaic_0001>

<bundles_post_ra>
// kernel: forward.1
= control target key start
LH: loop header
LB: loop body
LE: loop exit
PB: predicated region body
PF: predicated region fallthrough
CT: control target
= control target key end

     0   :  { %10 = vsyncpa [#allocation3], 0  ;;  %s5678_s0 = inlined_call_operand.hbm [shape: f32[1,32], index: 0, kind: input, shape index: {}]   ;;  %s5679_s1 = inlined_call_operand.vmem [shape: s32[1,512], index: 1, kind: input, shape index: {}]   ;;  %s5680_s2 = inlined_call_operand.hbm [shape: bf16[512,2048], index: 2, kind: input, shape index: {}]   ;;  %s5681_s3 = inlined_call_operand.vmem [shape: bf16[576,16], index: 3, kind: input, shape index: {}]   ;;  %s5682_s4 = inlined_call_operand.hbm [shape: f32[1,34], index: 4, kind: input, shape index: {}]   ;;  %s5683_s5 = inlined_call_operand.hbm [shape: f32[1,2], index: 5, kind: output, shape index: {}]  }
   0x1   :  { %11 = vsyncpa [#allocation6], 0 }
   0x2   :  { %12 = vsyncpa [#allocation4], 0  ;;  %s5271_s18 = smov [#allocation5]   ;;  %s5177_s22 = scalar_lea.hbm %s5680_s2, 65536 }
   0x3   :  { %s30_s19 = sshll.u32 %s5271_s18, 4  ;;  %p5178_p0 = scmp.ne.s32.totalorder %s5680_s2, %s5177_s22  ;;  %s31_s19 = int_to_ptr.vmem [resolvable:$true] %s30_s19 }
   0x4   :  { %p5181_p1 = scmp.lt.u32.totalorder %s5177_s22, %s5680_s2 }
   0x6   :  { %p5183_p2 = pnand %p5181_p1, %p5178_p0 }
   0x8   :  { %5186 = shalt.err (!%p5183_p2)
}
   0x9   :  { %s5187_s27 = scalar_lea.vmem %s31_s19, 65536  ;;  %p5192_p4 = scmp.lt.s32.totalorder %s31_s19, %s31_s19 }
   0xa   :  { %p5188_p3 = scmp.ne.s32.totalorder %s31_s19, %s5187_s27  ;;  %p5193_p5 = scmp.lt.s32.totalorder %s5187_s27, %s5187_s27 }
   0xc   :  { %p5194_p6 = por %p5193_p5, %p5192_p4 }
   0xe   :  { %p5195_p7 = pnand %p5194_p6, %p5188_p3 }
  0x10   :  { %5198 = shalt.err (!%p5195_p7)
}
  0x11   :  { %s5272_s28 = smov 1024   ;;  %s5273_s29 = smov 64  }
  0x12   :  { %36 = dma.hbm_to_vmem [thread:$0]  %s5680_s2, 65536, %s31_s19, [#allocation6], %s5272_s28, %s5272_s28, %s5273_s29  }
  0x13   :  { %s5274_s7 = smov [#allocation2]   ;;  %s5275_s9 = smov [#allocation7]  }
  0x14   :  { %s19_s8 = sshll.u32 %s5274_s7, 4  ;;  %s45_s10 = sshll.u32 %s5275_s9, 4  ;;  %s20_s8 = int_to_ptr.vmem [resolvable:$true] %s19_s8  ;;  %s46_s10 = int_to_ptr.vmem [resolvable:$true] %s45_s10 }
  0x15   :  { %s5199_s13 = scalar_lea.hbm %s5678_s0, 16 }
  0x16   :  { %p5200_p8 = scmp.ne.s32.totalorder %s5678_s0, %s5199_s13  ;;  %p5203_p9 = scmp.lt.u32.totalorder %s5199_s13, %s5678_s0 }
  0x18   :  { %p5205_p10 = pnand %p5203_p9, %p5200_p8 }
  0x1a   :  { %5208 = shalt.err (!%p5205_p10)
}
  0x1b   :  { %s5209_s2 = scalar_lea.vmem %s20_s8, 16  ;;  %s5213_s18 = scalar_lea.vmem %s20_s8, 32 }
  0x1c   :  { %p5210_p11 = scmp.ne.s32.totalorder %s20_s8, %s5209_s2  ;;  %p5214_p12 = scmp.lt.s32.totalorder %s20_s8, %s20_s8 }
  0x1d   :  { %p5215_p13 = scmp.lt.s32.totalorder %s5213_s18, %s5209_s2 }
  0x1f   :  { %p5216_p0 = por %p5215_p13, %p5214_p12 }
  0x21   :  { %p5217_p1 = pnand %p5216_p0, %p5210_p11 }
  0x23   :  { %5220 = shalt.err (!%p5217_p1)
}
  0x24   :  { %22 = dma.hbm_to_vmem [thread:$0]  %s5678_s0, 16, %s20_s8, [#allocation3]  }
  0x25   :  { %s5221_s23 = scalar_lea.hbm %s5682_s4, 16 }
  0x26   :  { %p5222_p2 = scmp.ne.s32.totalorder %s5682_s4, %s5221_s23  ;;  %p5225_p3 = scmp.lt.u32.totalorder %s5221_s23, %s5682_s4 }
  0x28   :  { %p5227_p4 = pnand %p5225_p3, %p5222_p2 }
  0x2a   :  { %5230 = shalt.err (!%p5227_p4)
}
  0x2b   :  { %s5231_s28 = scalar_lea.vmem %s46_s10, 16  ;;  %s5235_s29 = scalar_lea.vmem %s46_s10, 32 }
  0x2c   :  { %p5232_p5 = scmp.ne.s32.totalorder %s46_s10, %s5231_s28  ;;  %p5236_p6 = scmp.lt.s32.totalorder %s46_s10, %s46_s10 }
  0x2d   :  { %p5237_p7 = scmp.lt.s32.totalorder %s5235_s29, %s5231_s28 }
  0x2f   :  { %p5238_p8 = por %p5237_p7, %p5236_p6 }
  0x31   :  { %p5239_p9 = pnand %p5238_p8, %p5232_p5 }
  0x33   :  { %5242 = shalt.err (!%p5239_p9)
}
  0x34   :  { %48 = dma.hbm_to_vmem [thread:$0]  %s5682_s4, 16, %s46_s10, [#allocation6]  }
  0x35   :  { %5265 = dma.done.wait [#allocation3], 16  }
  0x36   :  { %5266 = vsyncadd [#allocation3], 4294967280 }
  0x37   :  { %5267 = dma.done.wait [#allocation6], 65552  }
  0x38   :  { %5268 = vsyncadd [#allocation6], 4294901744  ;;  %v5276_v0 = vmov 0.0   ;;  %vm5277_vm0 = vmmov 0   ;;  %v5133_v1 = vld [vmem:[%s5681_s3] sm:$0xff]   ;;  %v5134_v2 = vld [vmem:[%s5681_s3 + $0x8] sm:$0xff]   ;;  %v199_v6 = vlaneseq }
  0x39   :  { %5070 = vmatprep.subr.bf16.mxu0 %v5276_v0  ;;  %5074 = vmatprep.mubr.msk.bf16.mxu0 %vm5277_vm0, %v5276_v0  ;;  %v132_v3 = vld [vmem:[#allocation2] sm:$0x1]  ;;  %v290_v4 = vld [vmem:[#allocation5 + $0x8] sm:$0xff]  ;;  %vm146_vm1 = vcmask 261120   ;;  %v5278_v34 = vmov 1.0|1.0  }
  0x3a   :  { %5078 = vmatprep.subr.bf16.mxu1 %v5276_v0  ;;  %5080 = vmatprep.mubr.msk.bf16.mxu1 %vm5277_vm0, %v5276_v0  ;;  %v298_v5 = vld [vmem:[#allocation5 + $0x48] sm:$0xff]  ;;  %v133_v10 = vpack.c.bf16 %v132_v3, %v132_v3  ;;  %v5361_v12 = vshrl.u32 %v199_v6, 7  ;;  %v5363_v16 = vand.u32 127, %v199_v6  ;;  %v5371_v24 = vld [vmem:[%s5679_s1] sm:$0xf]  ;;  %s5279_s12 = smov 112  }
  0x3b   :  { %5071 = vmatpush3.bf16.msra.mxu0 %v5133_v1  ;;  %v4412_v7 = vcombine.high %v290_v4, %v298_v5  ;;  %v306_v8 = vld [vmem:[#allocation5 + $0x88] sm:$0xff]  ;;  %v4411_v11 = vcombine.low %v290_v4, %v298_v5  ;;  %vm206_vm10 = vcmask 130048   ;;  %s5280_s18 = smov 96   ;;  %vm4375_vm11 = vcmask 8192  }
  0x3c   :  { %5072 = vmatprep.subr.bf16.mxu0 %v5276_v0  ;;  %v314_v9 = vld [vmem:[#allocation5 + $0xc8] sm:$0xff]  ;;  %v267_v18 = vsub.s32 1, %v5361_v12  ;;  %v271_v20 = vsub.s32 2, %v5361_v12  ;;  %v257_v23 = vadd.s32 128, %v5363_v16  ;;  %v5375_v28 = vadd.s32 256, %v5363_v16 }
  0x3d   :  { %v4428_v13 = vcombine.high %v306_v8, %v314_v9  ;;  %v322_v14 = vld [vmem:[#allocation5 + $0x108] sm:$0xff]  ;;  %v4427_v17 = vcombine.low %v306_v8, %v314_v9 }
  0x3e   :  { %v330_v15 = vld [vmem:[#allocation5 + $0x148] sm:$0xff]  ;;  %v268_v26 = vrot.slane %v5371_v24, %v267_v18  ;;  %v5378_v29 = vrot.slane %v5371_v24, %v271_v20  ;;  %v275_v18 = vsub.s32 3, %v5361_v12 }
  0x3f   :  { %5073 = vmatpush3.bf16.msra.mxu0 %v5134_v2  ;;  %v4444_v19 = vcombine.high %v322_v14, %v330_v15  ;;  %v338_v21 = vld [vmem:[#allocation5 + $0x188] sm:$0xff]  ;;  %v4443_v25 = vcombine.low %v322_v14, %v330_v15  ;;  %v201_v14 = vsub.s32 0, %v5361_v12 }
  0x40   :  { %3443 = vmatprep.subr.bf16.mxu0 %v4412_v7  ;;  %v346_v22 = vld [vmem:[#allocation5 + $0x1c8] sm:$0xff]  ;;  %vm278_vm2 = vcmp.eq.s32.totalorder %v257_v23, %v268_v26  ;;  %vm279_vm4 = vcmp.eq.s32.totalorder %v5375_v28, %v5378_v29  ;;  %v276_v26 = vrot.slane %v5371_v24, %v275_v18  ;;  %v340_v29 = vld [vmem:[#allocation5 + $0x198] sm:$0xff] }
  0x41   :  { %v4460_v27 = vcombine.high %v338_v21, %v346_v22  ;;  %v354_v30 = vld [vmem:[#allocation5 + $0x208] sm:$0xff]  ;;  %vm5380_vm3 = vmpackc.low %vm278_vm2, %vm278_vm2  ;;  %v4459_v33 = vcombine.low %v338_v21, %v346_v22  ;;  %v264_v21 = vrot.slane %v5371_v24, %v201_v14 }
  0x42   :  { %5075 = vmatmul.mubr.msk.bf16.vlgmr.msra.gmra.mrb[0].mxu0 %vm146_vm1, %v133_v10  ;;  %v362_v31 = vld [vmem:[#allocation5 + $0x248] sm:$0xff]  ;;  %vm5426_vm9 = vmpackc.low %vm279_vm4, %vm279_vm4 }
  0x43   :  { %3444 = vmatpush1.bf16.msra.mxu0 %v4411_v11  ;;  %4930 = vmatprep.mubr.msk.bf16.mxu0 %vm5380_vm3, %v5278_v34  ;;  %v4476_v35 = vcombine.high %v354_v30, %v362_v31  ;;  %v370_v36 = vld [vmem:[#allocation5 + $0x288] sm:$0xff]  ;;  %v4475_v38 = vcombine.low %v354_v30, %v362_v31  ;;  %vm277_vm5 = vcmp.eq.s32.totalorder %v5363_v16, %v264_v21 }
  0x44   :  { %3445 = vmatprep.subr.bf16.mxu0 %v4428_v13  ;;  %v378_v37 = vld [vmem:[#allocation5 + $0x2c8] sm:$0xff]  ;;  %vm5397_vm7 = vmpackc.low %vm277_vm5, %vm277_vm5 }
  0x45   :  { %v4492_v39 = vcombine.high %v370_v36, %v378_v37  ;;  %v386_v40 = vld [vmem:[#allocation5 + $0x308] sm:$0xff]  ;;  %v4491_v42 = vcombine.low %v370_v36, %v378_v37 }
  0x46   :  { %v394_v41 = vld [vmem:[#allocation5 + $0x348] sm:$0xff] }
  0x47   :  { %3446 = vmatpush1.bf16.msra.mxu0 %v4427_v17  ;;  %v4508_v43 = vcombine.high %v386_v40, %v394_v41  ;;  %v402_v44 = vld [vmem:[#allocation5 + $0x388] sm:$0xff]  ;;  %v4507_v46 = vcombine.low %v386_v40, %v394_v41 }
  0x48   :  { %3447 = vmatprep.subr.bf16.mxu0 %v4444_v19  ;;  %v410_v45 = vld [vmem:[#allocation5 + $0x3c8] sm:$0xff] }
  0x49   :  { %v418_v47 = vld [vmem:[#allocation5 + $0x408] sm:$0xff]  ;;  %v4524_v49 = vcombine.high %v402_v44, %v410_v45  ;;  %v4523_v50 = vcombine.low %v402_v44, %v410_v45 }
  0x4a   :  { %v426_v48 = vld [vmem:[#allocation5 + $0x448] sm:$0xff] }
  0x4b   :  { %3448 = vmatpush1.bf16.msra.mxu0 %v4443_v25  ;;  %v434_v51 = vld [vmem:[#allocation5 + $0x488] sm:$0xff]  ;;  %v4540_v53 = vcombine.high %v418_v47, %v426_v48  ;;  %v4539_v54 = vcombine.low %v418_v47, %v426_v48  ;;  %v259_v25 = vadd.s32 384, %v5363_v16 }
  0x4c   :  { %3449 = vmatprep.subr.bf16.mxu0 %v4460_v27  ;;  %v442_v52 = vld [vmem:[#allocation5 + $0x4c8] sm:$0xff] }
  0x4d   :  { %v450_v55 = vld [vmem:[#allocation5 + $0x508] sm:$0xff]  ;;  %v4556_v57 = vcombine.high %v434_v51, %v442_v52  ;;  %v4555_v58 = vcombine.low %v434_v51, %v442_v52  ;;  %vm280_vm6 = vcmp.eq.s32.totalorder %v259_v25, %v276_v26 }
  0x4e   :  { %v458_v56 = vld [vmem:[#allocation5 + $0x548] sm:$0xff]  ;;  %vm5401_vm8 = vmpackc.low %vm280_vm6, %vm280_vm6 }
  0x4f   :  { %3450 = vmatpush1.bf16.msra.mxu0 %v4459_v33  ;;  %v466_v59 = vld [vmem:[#allocation5 + $0x588] sm:$0xff]  ;;  %v4572_v61 = vcombine.high %v450_v55, %v458_v56  ;;  %v4571_v62 = vcombine.low %v450_v55, %v458_v56 }
  0x50   :  { %3451 = vmatprep.subr.bf16.mxu0 %v4476_v35  ;;  %v474_v60 = vld [vmem:[#allocation5 + $0x5c8] sm:$0xff] }
  0x51   :  { %v482_v63 = vld [vmem:[#allocation5 + $0x608] sm:$0xff]  ;;  %v4588_v2 = vcombine.high %v466_v59, %v474_v60  ;;  %v4587_v3 = vcombine.low %v466_v59, %v474_v60 }
  0x52   :  { %v490_v1 = vld [vmem:[#allocation5 + $0x648] sm:$0xff] }
  0x53   :  { %3452 = vmatpush1.bf16.msra.mxu0 %v4475_v38  ;;  %v498_v4 = vld [vmem:[#allocation5 + $0x688] sm:$0xff]  ;;  %v4604_v6 = vcombine.high %v482_v63, %v490_v1  ;;  %v4603_v7 = vcombine.low %v482_v63, %v490_v1  ;;  %v5416_v63 = vld [vmem:[#allocation5 + $0x40] sm:$0xff] }
  0x54   :  { %3453 = vmatprep.subr.bf16.mxu0 %v4492_v39  ;;  %v506_v5 = vld [vmem:[#allocation5 + $0x6c8] sm:$0xff] }
  0x55   :  { %v514_v8 = vld [vmem:[#allocation5 + $0x708] sm:$0xff]  ;;  %v4620_v9 = vcombine.high %v498_v4, %v506_v5  ;;  %v4619_v11 = vcombine.low %v498_v4, %v506_v5 }
  0x56   :  { %v522_v10 = vld [vmem:[#allocation5 + $0x748] sm:$0xff] }
  0x57   :  { %3454 = vmatpush1.bf16.msra.mxu0 %v4491_v42  ;;  %v4636_v13 = vcombine.high %v514_v8, %v522_v10  ;;  %v530_v15 = vld [vmem:[#allocation5 + $0x788] sm:$0xff]  ;;  %v4635_v19 = vcombine.low %v514_v8, %v522_v10 }
  0x58   :  { %3455 = vmatprep.subr.bf16.mxu0 %v4508_v43  ;;  %v538_v17 = vld [vmem:[#allocation5 + $0x7c8] sm:$0xff] }
  0x59   :  { %v4652_v20 = vcombine.high %v530_v15, %v538_v17  ;;  %v546_v22 = vld [vmem:[#allocation5 + $0x808] sm:$0xff]  ;;  %v4651_v27 = vcombine.low %v530_v15, %v538_v17 }
  0x5a   :  { %v554_v23 = vld [vmem:[#allocation5 + $0x848] sm:$0xff] }
  0x5b   :  { %3456 = vmatpush1.bf16.msra.mxu0 %v4507_v46  ;;  %v4668_v30 = vcombine.high %v546_v22, %v554_v23  ;;  %v562_v31 = vld [vmem:[#allocation5 + $0x888] sm:$0xff]  ;;  %v4667_v35 = vcombine.low %v546_v22, %v554_v23 }
  0x5c   :  { %3457 = vmatprep.subr.bf16.mxu0 %v4524_v49  ;;  %v570_v33 = vld [vmem:[#allocation5 + $0x8c8] sm:$0xff] }
  0x5d   :  { %v4684_v37 = vcombine.high %v562_v31, %v570_v33  ;;  %v578_v24 = vld [vmem:[#allocation5 + $0x908] sm:$0xff]  ;;  %v4683_v16 = vcombine.low %v562_v31, %v570_v33 }
  0x5e   :  { %v586_v39 = vld [vmem:[#allocation5 + $0x948] sm:$0xff] }
  0x5f   :  { %3458 = vmatpush1.bf16.msra.mxu0 %v4523_v50  ;;  %v4700_v40 = vcombine.high %v578_v24, %v586_v39  ;;  %v594_v41 = vld [vmem:[#allocation5 + $0x988] sm:$0xff]  ;;  %v4699_v43 = vcombine.low %v578_v24, %v586_v39 }
  0x60   :  { %3459 = vmatprep.subr.bf16.mxu0 %v4540_v53  ;;  %v602_v42 = vld [vmem:[#allocation5 + $0x9c8] sm:$0xff] }
  0x61   :  { %v4716_v44 = vcombine.high %v594_v41, %v602_v42  ;;  %v610_v45 = vld [vmem:[#allocation5 + $0xa08] sm:$0xff]  ;;  %v4715_v47 = vcombine.low %v594_v41, %v602_v42 }
  0x62   :  { %v618_v46 = vld [vmem:[#allocation5 + $0xa48] sm:$0xff] }
  0x63   :  { %3460 = vmatpush1.bf16.msra.mxu0 %v4539_v54  ;;  %v4732_v48 = vcombine.high %v610_v45, %v618_v46  ;;  %v626_v49 = vld [vmem:[#allocation5 + $0xa88] sm:$0xff]  ;;  %v4731_v51 = vcombine.low %v610_v45, %v618_v46 }
  0x64   :  { %3461 = vmatprep.subr.bf16.mxu0 %v4556_v57  ;;  %v634_v50 = vld [vmem:[#allocation5 + $0xac8] sm:$0xff] }
  0x65   :  { %v4748_v52 = vcombine.high %v626_v49, %v634_v50  ;;  %v642_v53 = vld [vmem:[#allocation5 + $0xb08] sm:$0xff]  ;;  %v4747_v55 = vcombine.low %v626_v49, %v634_v50 }
  0x66   :  { %v650_v54 = vld [vmem:[#allocation5 + $0xb48] sm:$0xff] }
  0x67   :  { %3462 = vmatpush1.bf16.msra.mxu0 %v4555_v58  ;;  %v4764_v56 = vcombine.high %v642_v53, %v650_v54  ;;  %v658_v57 = vld [vmem:[#allocation5 + $0xb88] sm:$0xff]  ;;  %v4763_v60 = vcombine.low %v642_v53, %v650_v54  ;;  %v332_v53 = vld [vmem:[#allocation5 + $0x158] sm:$0xff] }
  0x68   :  { %3463 = vmatprep.subr.bf16.mxu0 %v4572_v61  ;;  %v666_v58 = vld [vmem:[#allocation5 + $0xbc8] sm:$0xff] }
  0x69   :  { %v5135_v59 = vld [vmem:[%s5681_s3 + $0x10] sm:$0xff]   ;;  %v4780_v61 = vcombine.high %v658_v57, %v666_v58  ;;  %v4779_v5 = vcombine.low %v658_v57, %v666_v58  ;;  %v356_v58 = vld [vmem:[#allocation5 + $0x218] sm:$0xff] }
  0x6a   :  { %5079 = vmatpush3.bf16.msra.mxu1 %v5135_v59  ;;  %v674_v1 = vld [vmem:[#allocation5 + $0xc08] sm:$0xff]  ;;  %v364_v59 = vld [vmem:[#allocation5 + $0x258] sm:$0xff] }
  0x6b   :  { %3464 = vmatpush1.bf16.msra.mxu0 %v4571_v62  ;;  %v5414_v62 = vld [vmem:[#allocation5] sm:$0xff]  ;;  %v698_v8 = vld [vmem:[#allocation5 + $0xcc8] sm:$0xff] }
  0x6c   :  { %3465 = vmatprep.subr.bf16.mxu0 %v4588_v2  ;;  %v682_v2 = vld [vmem:[#allocation5 + $0xc48] sm:$0xff]  ;;  %v4409_v4 = vcombine.low %v5414_v62, %v5416_v63 }
  0x6d   :  { %v722_v18 = vld [vmem:[#allocation5 + $0xd88] sm:$0xff] }
  0x6e   :  { %v738_v22 = vld [vmem:[#allocation5 + $0xe08] sm:$0xff] }
  0x6f   :  { %3466 = vmatpush1.bf16.msra.mxu0 %v4587_v3  ;;  %v4410_v3 = vcombine.high %v5414_v62, %v5416_v63  ;;  %v746_v23 = vld [vmem:[#allocation5 + $0xe48] sm:$0xff]  ;;  %v716_v62 = vld [vmem:[#allocation5 + $0xd58] sm:$0xff] }
  0x70   :  { %3467 = vmatprep.subr.bf16.mxu0 %v4604_v6  ;;  %v4796_v6 = vcombine.high %v674_v1, %v682_v2  ;;  %v4860_v26 = vcombine.high %v738_v22, %v746_v23  ;;  %v4859_v31 = vcombine.low %v738_v22, %v746_v23  ;;  %v444_v22 = vld [vmem:[#allocation5 + $0x4d8] sm:$0xff]  ;;  %v5157_v50 = vld [vmem:[%s5681_s3 + $0x30] sm:$0xff]  }
  0x71   :  { %3361 = vmatprep.subr.bf16.mxu1 %v4410_v3  ;;  %v4479_v3 = vcombine.low %v356_v58, %v364_v59 }
  0x73   :  { %3468 = vmatpush1.bf16.msra.mxu0 %v4603_v7  ;;  %v690_v7 = vld [vmem:[#allocation5 + $0xc88] sm:$0xff] }
  0x74   :  { %3469 = vmatprep.subr.bf16.mxu0 %v4620_v9  ;;  %v4795_v9 = vcombine.low %v674_v1, %v682_v2  ;;  %v4812_v10 = vcombine.high %v690_v7, %v698_v8  ;;  %v4811_v15 = vcombine.low %v690_v7, %v698_v8  ;;  %v372_v1 = vld [vmem:[#allocation5 + $0x298] sm:$0xff] }
  0x75   :  { %v380_v2 = vld [vmem:[#allocation5 + $0x2d8] sm:$0xff] }
  0x76   :  { %v396_v7 = vld [vmem:[#allocation5 + $0x358] sm:$0xff]  ;;  %v4495_v8 = vcombine.low %v372_v1, %v380_v2 }
  0x77   :  { %3470 = vmatpush1.bf16.msra.mxu0 %v4619_v11  ;;  %v706_v11 = vld [vmem:[#allocation5 + $0xd08] sm:$0xff] }
  0x78   :  { %3471 = vmatprep.subr.bf16.mxu0 %v4636_v13  ;;  %v714_v13 = vld [vmem:[#allocation5 + $0xd48] sm:$0xff] }
  0x79   :  { %v4828_v17 = vcombine.high %v706_v11, %v714_v13 }
  0x7b   :  { %3472 = vmatpush1.bf16.msra.mxu0 %v4635_v19  ;;  %v730_v19 = vld [vmem:[#allocation5 + $0xdc8] sm:$0xff] }
  0x7c   :  { %3473 = vmatprep.subr.bf16.mxu0 %v4652_v20  ;;  %v4827_v20 = vcombine.low %v706_v11, %v714_v13  ;;  %v4844_v21 = vcombine.high %v722_v18, %v730_v19  ;;  %v4843_v25 = vcombine.low %v722_v18, %v730_v19  ;;  %v412_v11 = vld [vmem:[#allocation5 + $0x3d8] sm:$0xff] }
  0x7d   :  { %v428_v18 = vld [vmem:[#allocation5 + $0x458] sm:$0xff] }
  0x7f   :  { %3474 = vmatpush1.bf16.msra.mxu0 %v4651_v27  ;;  %v754_v27 = vld [vmem:[#allocation5 + $0xe88] sm:$0xff] }
  0x80   :  { %3484 = vmatprep.subr.bf16.mxu0 %v4668_v30  ;;  %v762_v30 = vld [vmem:[#allocation5 + $0xec8] sm:$0xff] }
  0x81   :  { %v4876_v33 = vcombine.high %v754_v27, %v762_v30  ;;  %v4875_v24 = vcombine.low %v754_v27, %v762_v30  ;;  %v460_v27 = vld [vmem:[#allocation5 + $0x558] sm:$0xff] }
  0x82   :  { %4932 = vmatmul.mubr.msk.bf16.vlgmr.msra.gmra.mrb[4].mxu0 %vm5397_vm7, %v5278_v34 }
  0x83   :  { %3485 = vmatpush1.bf16.msra.mxu0 %v4667_v35  ;;  %4934 = vmatprep.mubr.msk.bf16.mxu0 %vm5401_vm8, %v5278_v34  ;;  %v770_v35 = vld [vmem:[#allocation5 + $0xf08] sm:$0xff] }
  0x84   :  { %3486 = vmatprep.subr.bf16.mxu0 %v4684_v37  ;;  %v778_v37 = vld [vmem:[#allocation5 + $0xf48] sm:$0xff] }
  0x85   :  { %v4892_v39 = vcombine.high %v770_v35, %v778_v37  ;;  %v4891_v41 = vcombine.low %v770_v35, %v778_v37  ;;  %v476_v35 = vld [vmem:[#allocation5 + $0x5d8] sm:$0xff] }
  0x87   :  { %3487 = vmatpush1.bf16.msra.mxu0 %v4683_v16  ;;  %v786_v16 = vld [vmem:[#allocation5 + $0xf88] sm:$0xff] }
  0x88   :  { %3488 = vmatprep.subr.bf16.mxu0 %v4700_v40  ;;  %v794_v40 = vld [vmem:[#allocation5 + $0xfc8] sm:$0xff] }
  0x89   :  { %v4908_v42 = vcombine.high %v786_v16, %v794_v40  ;;  %v4907_v45 = vcombine.low %v786_v16, %v794_v40  ;;  %v492_v16 = vld [vmem:[#allocation5 + $0x658] sm:$0xff] }
  0x8b   :  { %3489 = vmatpush1.bf16.msra.mxu0 %v4699_v43  ;;  %v292_v43 = vld [vmem:[#allocation5 + $0x18] sm:$0xff] }
  0x8c   :  { %3490 = vmatprep.subr.bf16.mxu0 %v4716_v44  ;;  %v300_v44 = vld [vmem:[#allocation5 + $0x58] sm:$0xff] }
  0x8d   :  { %v4416_v46 = vcombine.high %v292_v43, %v300_v44  ;;  %v4415_v49 = vcombine.low %v292_v43, %v300_v44  ;;  %v508_v43 = vld [vmem:[#allocation5 + $0x6d8] sm:$0xff] }
  0x8f   :  { %3491 = vmatpush1.bf16.msra.mxu0 %v4715_v47  ;;  %v308_v47 = vld [vmem:[#allocation5 + $0x98] sm:$0xff] }
  0x90   :  { %3492 = vmatprep.subr.bf16.mxu0 %v4732_v48  ;;  %v316_v48 = vld [vmem:[#allocation5 + $0xd8] sm:$0xff] }
  0x91   :  { %v4431_v54 = vcombine.low %v308_v47, %v316_v48 }
  0x93   :  { %3493 = vmatpush1.bf16.msra.mxu0 %v4731_v51  ;;  %v4432_v51 = vcombine.high %v308_v47, %v316_v48  ;;  %v524_v47 = vld [vmem:[#allocation5 + $0x758] sm:$0xff] }
  0x94   :  { %3494 = vmatprep.subr.bf16.mxu0 %v4748_v52  ;;  %v324_v52 = vld [vmem:[#allocation5 + $0x118] sm:$0xff] }
  0x95   :  { %v4448_v28 = vcombine.high %v324_v52, %v332_v53 }
  0x97   :  { %3495 = vmatpush1.bf16.msra.mxu0 %v4747_v55  ;;  %v348_v55 = vld [vmem:[#allocation5 + $0x1d8] sm:$0xff] }
  0x98   :  { %3496 = vmatprep.subr.bf16.mxu0 %v4764_v56  ;;  %v4447_v56 = vcombine.low %v324_v52, %v332_v53  ;;  %v4464_v57 = vcombine.high %v340_v29, %v348_v55  ;;  %v540_v52 = vld [vmem:[#allocation5 + $0x7d8] sm:$0xff] }
  0x9b   :  { %3497 = vmatpush1.bf16.msra.mxu0 %v4763_v60  ;;  %v4463_v60 = vcombine.low %v340_v29, %v348_v55  ;;  %v556_v29 = vld [vmem:[#allocation5 + $0x858] sm:$0xff] }
  0x9c   :  { %3498 = vmatprep.subr.bf16.mxu0 %v4780_v61  ;;  %v4480_v61 = vcombine.high %v356_v58, %v364_v59  ;;  %v564_v59 = vld [vmem:[#allocation5 + $0x898] sm:$0xff] }
  0x9f   :  { %3499 = vmatpush1.bf16.msra.mxu0 %v4779_v5  ;;  %v4496_v5 = vcombine.high %v372_v1, %v380_v2  ;;  %v580_v2 = vld [vmem:[#allocation5 + $0x918] sm:$0xff] }
  0xa0   :  { %3500 = vmatprep.subr.bf16.mxu0 %v4796_v6  ;;  %v388_v6 = vld [vmem:[#allocation5 + $0x318] sm:$0xff] }
  0xa1   :  { %v4511_v13 = vcombine.low %v388_v6, %v396_v7 }
  0xa3   :  { %3501 = vmatpush1.bf16.msra.mxu0 %v4795_v9  ;;  %v4512_v9 = vcombine.high %v388_v6, %v396_v7  ;;  %v604_v6 = vld [vmem:[#allocation5 + $0x9d8] sm:$0xff] }
  0xa4   :  { %3502 = vmatprep.subr.bf16.mxu0 %v4812_v10  ;;  %v404_v10 = vld [vmem:[#allocation5 + $0x398] sm:$0xff] }
  0xa5   :  { %v4527_v19 = vcombine.low %v404_v10, %v412_v11 }
  0xa7   :  { %3503 = vmatpush1.bf16.msra.mxu0 %v4811_v15  ;;  %v4528_v15 = vcombine.high %v404_v10, %v412_v11  ;;  %v620_v10 = vld [vmem:[#allocation5 + $0xa58] sm:$0xff] }
  0xa8   :  { %3504 = vmatprep.subr.bf16.mxu0 %v4828_v17  ;;  %v420_v17 = vld [vmem:[#allocation5 + $0x418] sm:$0xff] }
  0xa9   :  { %v4543_v23 = vcombine.low %v420_v17, %v428_v18 }
  0xab   :  { %3505 = vmatpush1.bf16.msra.mxu0 %v4827_v20  ;;  %v4544_v20 = vcombine.high %v420_v17, %v428_v18  ;;  %v636_v17 = vld [vmem:[#allocation5 + $0xad8] sm:$0xff] }
  0xac   :  { %3506 = vmatprep.subr.bf16.mxu0 %v4844_v21  ;;  %v436_v21 = vld [vmem:[#allocation5 + $0x498] sm:$0xff] }
  0xad   :  { %v4559_v30 = vcombine.low %v436_v21, %v444_v22 }
  0xaf   :  { %3507 = vmatpush1.bf16.msra.mxu0 %v4843_v25  ;;  %v4560_v25 = vcombine.high %v436_v21, %v444_v22  ;;  %v652_v21 = vld [vmem:[#allocation5 + $0xb58] sm:$0xff] }
  0xb0   :  { %3508 = vmatprep.subr.bf16.mxu0 %v4860_v26  ;;  %v452_v26 = vld [vmem:[#allocation5 + $0x518] sm:$0xff] }
  0xb1   :  { %v4575_v37 = vcombine.low %v452_v26, %v460_v27 }
  0xb3   :  { %3509 = vmatpush1.bf16.msra.mxu0 %v4859_v31  ;;  %v4576_v31 = vcombine.high %v452_v26, %v460_v27  ;;  %v660_v26 = vld [vmem:[#allocation5 + $0xb98] sm:$0xff] }
  0xb4   :  { %3510 = vmatprep.subr.bf16.mxu0 %v4876_v33  ;;  %v468_v33 = vld [vmem:[#allocation5 + $0x598] sm:$0xff] }
  0xb5   :  { %v4591_v40 = vcombine.low %v468_v33, %v476_v35  ;;  %v668_v27 = vld [vmem:[#allocation5 + $0xbd8] sm:$0xff] }
  0xb7   :  { %3511 = vmatpush1.bf16.msra.mxu0 %v4875_v24  ;;  %v4592_v24 = vcombine.high %v468_v33, %v476_v35 }
  0xb8   :  { %3512 = vmatprep.subr.bf16.mxu0 %v4892_v39  ;;  %v484_v39 = vld [vmem:[#allocation5 + $0x618] sm:$0xff] }
  0xb9   :  { %v4607_v44 = vcombine.low %v484_v39, %v492_v16 }
  0xbb   :  { %3513 = vmatpush1.bf16.msra.mxu0 %v4891_v41  ;;  %v4608_v41 = vcombine.high %v484_v39, %v492_v16 }
  0xbc   :  { %3514 = vmatprep.subr.bf16.mxu0 %v4908_v42  ;;  %v500_v42 = vld [vmem:[#allocation5 + $0x698] sm:$0xff] }
  0xbd   :  { %v4623_v48 = vcombine.low %v500_v42, %v508_v43 }
  0xbf   :  { %3515 = vmatpush1.bf16.msra.mxu0 %v4907_v45  ;;  %v4624_v45 = vcombine.high %v500_v42, %v508_v43  ;;  %v684_v42 = vld [vmem:[#allocation5 + $0xc58] sm:$0xff] }
  0xc0   :  { %3607 = vmatprep.subr.bf16.mxu0 %v4416_v46  ;;  %v516_v46 = vld [vmem:[#allocation5 + $0x718] sm:$0xff] }
  0xc1   :  { %v4639_v53 = vcombine.low %v516_v46, %v524_v47 }
  0xc2   :  { %4936 = vmatmul.mubr.msk.bf16.vlgmr.msra.gmra.mrb[4].mxu0 %vm5426_vm9, %v5278_v34 }
  0xc3   :  { %3608 = vmatpush1.bf16.msra.mxu0 %v4415_v49  ;;  %4946 = vmatprep.mubr.msk.bf16.mxu0 %vm5380_vm3, %v5278_v34  ;;  %v4640_v49 = vcombine.high %v516_v46, %v524_v47  ;;  %v321_v46 = vld [vmem:[#allocation5 + $0x100] sm:$0xff] }
  0xc4   :  { %3609 = vmatprep.subr.bf16.mxu0 %v4432_v51  ;;  %v532_v51 = vld [vmem:[#allocation5 + $0x798] sm:$0xff]  ;;  %v329_v47 = vld [vmem:[#allocation5 + $0x140] sm:$0xff] }
  0xc5   :  { %v4655_v55 = vcombine.low %v532_v51, %v540_v52 }
  0xc7   :  { %3610 = vmatpush1.bf16.msra.mxu0 %v4431_v54  ;;  %v4656_v54 = vcombine.high %v532_v51, %v540_v52  ;;  %v692_v51 = vld [vmem:[#allocation5 + $0xc98] sm:$0xff] }
  0xc8   :  { %3611 = vmatprep.subr.bf16.mxu0 %v4448_v28  ;;  %v548_v28 = vld [vmem:[#allocation5 + $0x818] sm:$0xff] }
  0xc9   :  { %v700_v52 = vld [vmem:[#allocation5 + $0xcd8] sm:$0xff] }
  0xcb   :  { %3612 = vmatpush1.bf16.msra.mxu0 %v4447_v56  ;;  %v131_v56 = vld [vmem:[#allocation7] sm:$0x1] }
  0xcc   :  { %3613 = vmatprep.subr.bf16.mxu0 %v4464_v57  ;;  %v4672_v57 = vcombine.high %v548_v28, %v556_v29  ;;  %v5438_v58 = vrot.slane %v131_v56, %v201_v14  ;;  %v596_v14 = vld [vmem:[#allocation5 + $0x998] sm:$0xff] }
  0xcd   :  { %v4719_v11 = vcombine.low %v596_v14, %v604_v6 }
  0xce   :  { %203 = vrot.lane.b32.xlu0 %v5438_v58, %s5279_s12 }
  0xcf   :  { %3614 = vmatpush1.bf16.msra.mxu0 %v4463_v60  ;;  %v572_v60 = vld [vmem:[#allocation5 + $0x8d8] sm:$0xff] }
  0xd0   :  { %3615 = vmatprep.subr.bf16.mxu0 %v4480_v61  ;;  %v4671_v61 = vcombine.low %v548_v28, %v556_v29  ;;  %v4688_v1 = vcombine.high %v564_v59, %v572_v60  ;;  %v337_v28 = vld [vmem:[#allocation5 + $0x180] sm:$0xff] }
  0xd1   :  { %v345_v29 = vld [vmem:[#allocation5 + $0x1c0] sm:$0xff] }
  0xd2   :  { %v4458_v63 = vcombine.high %v337_v28, %v345_v29  ;;  %4371 = vrot.lane.b32.xlu0 %v5438_v58, %s5280_s18 }
  0xd3   :  { %3616 = vmatpush1.bf16.msra.mxu0 %v4479_v3  ;;  %v588_v3 = vld [vmem:[#allocation5 + $0x958] sm:$0xff] }
  0xd4   :  { %3617 = vmatprep.subr.bf16.mxu0 %v4496_v5  ;;  %v4687_v5 = vcombine.low %v564_v59, %v572_v60  ;;  %v4704_v12 = vcombine.high %v580_v2, %v588_v3  ;;  %v4703_v7 = vcombine.low %v580_v2, %v588_v3  ;;  %v353_v59 = vld [vmem:[#allocation5 + $0x200] sm:$0xff]  ;;  %v724_v2 = vld [vmem:[#allocation5 + $0xd98] sm:$0xff] }
  0xd5   :  { %v361_v60 = vld [vmem:[#allocation5 + $0x240] sm:$0xff]  ;;  %v732_v3 = vld [vmem:[#allocation5 + $0xdd8] sm:$0xff] }
  0xd7   :  { %3618 = vmatpush1.bf16.msra.mxu0 %v4495_v8  ;;  %v4720_v8 = vcombine.high %v596_v14, %v604_v6  ;;  %v369_v14 = vld [vmem:[#allocation5 + $0x280] sm:$0xff] }
  0xd8   :  { %3619 = vmatprep.subr.bf16.mxu0 %v4512_v9  ;;  %v612_v9 = vld [vmem:[#allocation5 + $0xa18] sm:$0xff]  ;;  %v377_v6 = vld [vmem:[#allocation5 + $0x2c0] sm:$0xff] }
  0xd9   :  { %v4735_v18 = vcombine.low %v612_v9, %v620_v10 }
  0xdb   :  { %3620 = vmatpush1.bf16.msra.mxu0 %v4511_v13  ;;  %v4736_v13 = vcombine.high %v612_v9, %v620_v10  ;;  %v740_v9 = vld [vmem:[#allocation5 + $0xe18] sm:$0xff] }
  0xdc   :  { %3621 = vmatprep.subr.bf16.mxu0 %v4528_v15  ;;  %v628_v15 = vld [vmem:[#allocation5 + $0xa98] sm:$0xff] }
  0xdd   :  { %v4751_v22 = vcombine.low %v628_v15, %v636_v17  ;;  %v748_v10 = vld [vmem:[#allocation5 + $0xe58] sm:$0xff] }
  0xdf   :  { %3622 = vmatpush1.bf16.msra.mxu0 %v4527_v19  ;;  %v4752_v19 = vcombine.high %v628_v15, %v636_v17  ;;  %v385_v15 = vld [vmem:[#allocation5 + $0x300] sm:$0xff] }
  0xe0   :  { %3623 = vmatprep.subr.bf16.mxu0 %v4544_v20  ;;  %v644_v20 = vld [vmem:[#allocation5 + $0xb18] sm:$0xff]  ;;  %v393_v17 = vld [vmem:[#allocation5 + $0x340] sm:$0xff] }
  0xe1   :  { %v4767_v35 = vcombine.low %v644_v20, %v652_v21 }
  0xe3   :  { %3624 = vmatpush1.bf16.msra.mxu0 %v4543_v23  ;;  %v4768_v23 = vcombine.high %v644_v20, %v652_v21  ;;  %v756_v20 = vld [vmem:[#allocation5 + $0xe98] sm:$0xff] }
  0xe4   :  { %3625 = vmatprep.subr.bf16.mxu0 %v4560_v25  ;;  %v764_v21 = vld [vmem:[#allocation5 + $0xed8] sm:$0xff] }
  0xe7   :  { %3626 = vmatpush1.bf16.msra.mxu0 %v4559_v30 }
  0xe8   :  { %3627 = vmatprep.subr.bf16.mxu0 %v4576_v31 }
  0xeb   :  { %3628 = vmatpush1.bf16.msra.mxu0 %v4575_v37  ;;  %v305_v37 = vld [vmem:[#allocation5 + $0x80] sm:$0xff] }
  0xec   :  { %3629 = vmatprep.subr.bf16.mxu0 %v4592_v24  ;;  %v313_v24 = vld [vmem:[#allocation5 + $0xc0] sm:$0xff] }
  0xef   :  { %3630 = vmatpush1.bf16.msra.mxu0 %v4591_v40  ;;  %v4784_v40 = vcombine.high %v660_v26, %v668_v27 }
  0xf0   :  { %3631 = vmatprep.subr.bf16.mxu0 %v4608_v41  ;;  %v676_v41 = vld [vmem:[#allocation5 + $0xc18] sm:$0xff] }
  0xf3   :  { %3632 = vmatpush1.bf16.msra.mxu0 %v4607_v44  ;;  %v4426_v44 = vcombine.high %v305_v37, %v313_v24 }
  0xf4   :  { %3633 = vmatprep.subr.bf16.mxu0 %v4624_v45  ;;  %v4783_v45 = vcombine.low %v660_v26, %v668_v27  ;;  %v409_v26 = vld [vmem:[#allocation5 + $0x3c0] sm:$0xff]  ;;  %v4880_v27 = vcombine.high %v756_v20, %v764_v21 }
  0xf7   :  { %3634 = vmatpush1.bf16.msra.mxu0 %v4623_v48  ;;  %v4800_v48 = vcombine.high %v676_v41, %v684_v42 }
  0xf8   :  { %3635 = vmatprep.subr.bf16.mxu0 %v4640_v49  ;;  %v4425_v49 = vcombine.low %v305_v37, %v313_v24  ;;  %v4879_v37 = vcombine.low %v756_v20, %v764_v21  ;;  %v417_v24 = vld [vmem:[#allocation5 + $0x400] sm:$0xff]  ;;  %v366_v20 = vld [vmem:[#allocation5 + $0x268] sm:$0xff] }
  0xfb   :  { %3636 = vmatpush1.bf16.msra.mxu0 %v4639_v53  ;;  %v4442_v53 = vcombine.high %v321_v46, %v329_v47 }
  0xfc   :  { %3637 = vmatprep.subr.bf16.mxu0 %v4656_v54  ;;  %v4799_v54 = vcombine.low %v676_v41, %v684_v42  ;;  %v788_v41 = vld [vmem:[#allocation5 + $0xf98] sm:$0xff] }
  0xfd   :  { %v796_v42 = vld [vmem:[#allocation5 + $0xfd8] sm:$0xff] }
  0xff   :  { %3638 = vmatpush1.bf16.msra.mxu0 %v4655_v55  ;;  %v4816_v55 = vcombine.high %v692_v51, %v700_v52 }
 0x100   :  { %3648 = vmatprep.subr.bf16.mxu0 %v4672_v57  ;;  %v708_v57 = vld [vmem:[#allocation5 + $0xd18] sm:$0xff] }
 0x102   :  { %4948 = vmatmul.mubr.msk.bf16.vlgmr.msra.gmra.mrb[8].mxu0 %vm5397_vm7, %v5278_v34 }
 0x103   :  { %3649 = vmatpush1.bf16.msra.mxu0 %v4671_v61  ;;  %4950 = vmatprep.mubr.msk.bf16.mxu0 %vm5401_vm8, %v5278_v34  ;;  %v4832_v61 = vcombine.high %v708_v57, %v716_v62 }
 0x104   :  { %3650 = vmatprep.subr.bf16.mxu0 %v4688_v1  ;;  %v4457_v1 = vcombine.low %v337_v28, %v345_v29  ;;  %v457_v28 = vld [vmem:[#allocation5 + $0x540] sm:$0xff] }
 0x107   :  { %3651 = vmatpush1.bf16.msra.mxu0 %v4687_v5  ;;  %v4474_v5 = vcombine.high %v353_v59, %v361_v60 }
 0x108   :  { %3652 = vmatprep.subr.bf16.mxu0 %v4704_v12  ;;  %v4831_v12 = vcombine.low %v708_v57, %v716_v62  ;;  %v318_v57 = vld [vmem:[#allocation5 + $0xe8] sm:$0xff] }
 0x10b   :  { %3653 = vmatpush1.bf16.msra.mxu0 %v4703_v7  ;;  %v4848_v7 = vcombine.high %v724_v2, %v732_v3 }
 0x10c   :  { %3654 = vmatprep.subr.bf16.mxu0 %v4720_v8  ;;  %v4473_v8 = vcombine.low %v353_v59, %v361_v60  ;;  %v473_v59 = vld [vmem:[#allocation5 + $0x5c0] sm:$0xff] }
 0x10f   :  { %3655 = vmatpush1.bf16.msra.mxu0 %v4719_v11  ;;  %v4490_v11 = vcombine.high %v369_v14, %v377_v6 }
 0x110   :  { %3656 = vmatprep.subr.bf16.mxu0 %v4736_v13  ;;  %v4847_v13 = vcombine.low %v724_v2, %v732_v3  ;;  %v334_v2 = vld [vmem:[#allocation5 + $0x168] sm:$0xff] }
 0x113   :  { %3657 = vmatpush1.bf16.msra.mxu0 %v4735_v18  ;;  %v4864_v18 = vcombine.high %v740_v9, %v748_v10 }
 0x114   :  { %3658 = vmatprep.subr.bf16.mxu0 %v4752_v19  ;;  %v4489_v19 = vcombine.low %v369_v14, %v377_v6  ;;  %v489_v14 = vld [vmem:[#allocation5 + $0x640] sm:$0xff] }
 0x115   :  { %v184_v25 = vpop.f32.mrb[0].mxu0 }
 0x116   :  { %v185_v30 = vadd.f32 %v184_v25, %v131_v56  ;;  %v5076_v31 = vpop.f32.mrb[1].mxu0  ;;  %v4441_v56 = vcombine.low %v321_v46, %v329_v47  ;;  %v401_v25 = vld [vmem:[#allocation5 + $0x380] sm:$0xff]  ;;  %v4912_v47 = vcombine.high %v788_v41, %v796_v42 }
 0x117   :  { %v187_v33 = vpop.f32.mrb[2].mxu0  ;;  %3659 = vmatpush1.bf16.msra.mxu0 %v4751_v22  ;;  %v4506_v22 = vcombine.high %v385_v15, %v393_v17  ;;  %v772_v31 = vld [vmem:[#allocation5 + $0xf18] sm:$0xff]  ;;  %v441_v46 = vld [vmem:[#allocation5 + $0x4c0] sm:$0xff] }
 0x118   :  { %v190_v39 = vmax.f32 %v185_v30, 0.0  ;;  %v5077_v16 = vpop.f32.mrb[3].mxu0  ;;  %3660 = vmatprep.subr.bf16.mxu0 %v4768_v23  ;;  %v4863_v23 = vcombine.low %v740_v9, %v748_v10  ;;  %v4505_v30 = vcombine.low %v385_v15, %v393_v17  ;;  %v780_v33 = vld [vmem:[#allocation5 + $0xf58] sm:$0xff]  ;;  %v350_v9 = vld [vmem:[#allocation5 + $0x1e8] sm:$0xff]  ;;  %v505_v15 = vld [vmem:[#allocation5 + $0x6c0] sm:$0xff] }
 0x119   :  { %v4896_v16 = vcombine.high %v772_v31, %v780_v33 }
 0x11a   :  { %v191_v43 = vpack.c.bf16 %v190_v39, %v190_v39  ;;  %v425_v39 = vld [vmem:[#allocation5 + $0x440] sm:$0xff] }
 0x11b   :  { %3661 = vmatpush1.bf16.msra.mxu0 %v4767_v35  ;;  %v4522_v35 = vcombine.high %v401_v25, %v409_v26 }
 0x11c   :  { %5081 = vmatmul.mubr.msk.bf16.vlgmr.msra.gmra.mrb[0].mxu1 %vm206_vm10, %v191_v43  ;;  %3662 = vmatprep.subr.bf16.mxu0 %v4784_v40  ;;  %v4521_v40 = vcombine.low %v401_v25, %v409_v26  ;;  %v4538_v43 = vcombine.high %v417_v24, %v425_v39  ;;  %v521_v25 = vld [vmem:[#allocation5 + $0x740] sm:$0xff] }
 0x11d   :  { %3362 = vmatpush1.bf16.msra.mxu1 %v4409_v4  ;;  %4922 = vmatprep.mubr.msk.bf16.mxu1 %vm5380_vm3, %v5278_v34  ;;  %v4815_v4 = vcombine.low %v692_v51, %v700_v52  ;;  %v302_v51 = vld [vmem:[#allocation5 + $0x68] sm:$0xff] }
 0x11e   :  { %3363 = vmatprep.subr.bf16.mxu1 %v4426_v44  ;;  %v4895_v44 = vcombine.low %v772_v31, %v780_v33  ;;  %v382_v31 = vld [vmem:[#allocation5 + $0x2e8] sm:$0xff] }
 0x11f   :  { %3663 = vmatpush1.bf16.msra.mxu0 %v4783_v45  ;;  %v433_v45 = vld [vmem:[#allocation5 + $0x480] sm:$0xff] }
 0x120   :  { %3664 = vmatprep.subr.bf16.mxu0 %v4800_v48  ;;  %v4537_v48 = vcombine.low %v417_v24, %v425_v39  ;;  %v4554_v52 = vcombine.high %v433_v45, %v441_v46  ;;  %v537_v24 = vld [vmem:[#allocation5 + $0x7c0] sm:$0xff] }
 0x121   :  { %3364 = vmatpush1.bf16.msra.mxu1 %v4425_v49  ;;  %v294_v49 = vld [vmem:[#allocation5 + $0x28] sm:$0xff] }
 0x122   :  { %3365 = vmatprep.subr.bf16.mxu1 %v4442_v53  ;;  %v4911_v53 = vcombine.low %v788_v41, %v796_v42  ;;  %v4420_v29 = vcombine.high %v294_v49, %v302_v51  ;;  %v398_v41 = vld [vmem:[#allocation5 + $0x368] sm:$0xff] }
 0x123   :  { %3665 = vmatpush1.bf16.msra.mxu0 %v4799_v54  ;;  %v449_v54 = vld [vmem:[#allocation5 + $0x500] sm:$0xff] }
 0x124   :  { %3666 = vmatprep.subr.bf16.mxu0 %v4816_v55  ;;  %v4553_v55 = vcombine.low %v433_v45, %v441_v46  ;;  %v4570_v62 = vcombine.high %v449_v54, %v457_v28  ;;  %v553_v45 = vld [vmem:[#allocation5 + $0x840] sm:$0xff] }
 0x125   :  { %3366 = vmatpush1.bf16.msra.mxu1 %v4441_v56  ;;  %v310_v56 = vld [vmem:[#allocation5 + $0xa8] sm:$0xff] }
 0x126   :  { %3367 = vmatprep.subr.bf16.mxu1 %v4458_v63  ;;  %v4419_v63 = vcombine.low %v294_v49, %v302_v51  ;;  %v4436_v60 = vcombine.high %v310_v56, %v318_v57  ;;  %v414_v49 = vld [vmem:[#allocation5 + $0x3e8] sm:$0xff] }
 0x127   :  { %3667 = vmatpush1.bf16.msra.mxu0 %v4815_v4  ;;  %v465_v4 = vld [vmem:[#allocation5 + $0x580] sm:$0xff] }
 0x128   :  { %3668 = vmatprep.subr.bf16.mxu0 %v4832_v61  ;;  %v4569_v61 = vcombine.low %v449_v54, %v457_v28  ;;  %v4586_v3 = vcombine.high %v465_v4, %v473_v59  ;;  %v569_v54 = vld [vmem:[#allocation5 + $0x8c0] sm:$0xff] }
 0x129   :  { %3368 = vmatpush1.bf16.msra.mxu1 %v4457_v1  ;;  %v326_v1 = vld [vmem:[#allocation5 + $0x128] sm:$0xff] }
 0x12a   :  { %3369 = vmatprep.subr.bf16.mxu1 %v4474_v5  ;;  %v4435_v5 = vcombine.low %v310_v56, %v318_v57  ;;  %v4452_v6 = vcombine.high %v326_v1, %v334_v2  ;;  %v430_v56 = vld [vmem:[#allocation5 + $0x468] sm:$0xff] }
 0x12b   :  { %3669 = vmatpush1.bf16.msra.mxu0 %v4831_v12  ;;  %v481_v12 = vld [vmem:[#allocation5 + $0x600] sm:$0xff] }
 0x12c   :  { %3670 = vmatprep.subr.bf16.mxu0 %v4848_v7  ;;  %v4585_v7 = vcombine.low %v465_v4, %v473_v59  ;;  %v4602_v10 = vcombine.high %v481_v12, %v489_v14  ;;  %v585_v4 = vld [vmem:[#allocation5 + $0x940] sm:$0xff] }
 0x12d   :  { %3370 = vmatpush1.bf16.msra.mxu1 %v4473_v8  ;;  %v342_v8 = vld [vmem:[#allocation5 + $0x1a8] sm:$0xff] }
 0x12e   :  { %3371 = vmatprep.subr.bf16.mxu1 %v4490_v11  ;;  %v4451_v11 = vcombine.low %v326_v1, %v334_v2  ;;  %v4468_v17 = vcombine.high %v342_v8, %v350_v9  ;;  %v446_v1 = vld [vmem:[#allocation5 + $0x4e8] sm:$0xff] }
 0x12f   :  { %3671 = vmatpush1.bf16.msra.mxu0 %v4847_v13  ;;  %v497_v13 = vld [vmem:[#allocation5 + $0x680] sm:$0xff] }
 0x130   :  { %3672 = vmatprep.subr.bf16.mxu0 %v4864_v18  ;;  %v4601_v18 = vcombine.low %v481_v12, %v489_v14  ;;  %v4618_v21 = vcombine.high %v497_v13, %v505_v15  ;;  %v601_v12 = vld [vmem:[#allocation5 + $0x9c0] sm:$0xff] }
 0x131   :  { %3372 = vmatpush1.bf16.msra.mxu1 %v4489_v19  ;;  %v358_v19 = vld [vmem:[#allocation5 + $0x228] sm:$0xff] }
 0x132   :  { %3373 = vmatprep.subr.bf16.mxu1 %v4506_v22  ;;  %v4467_v22 = vcombine.low %v342_v8, %v350_v9  ;;  %v4484_v26 = vcombine.high %v358_v19, %v366_v20  ;;  %v462_v8 = vld [vmem:[#allocation5 + $0x568] sm:$0xff] }
 0x133   :  { %3673 = vmatpush1.bf16.msra.mxu0 %v4863_v23  ;;  %v513_v23 = vld [vmem:[#allocation5 + $0x700] sm:$0xff] }
 0x134   :  { %3674 = vmatprep.subr.bf16.mxu0 %v4880_v27  ;;  %v4617_v27 = vcombine.low %v497_v13, %v505_v15  ;;  %v4634_v33 = vcombine.high %v513_v23, %v521_v25  ;;  %v617_v13 = vld [vmem:[#allocation5 + $0xa40] sm:$0xff] }
 0x135   :  { %3374 = vmatpush1.bf16.msra.mxu1 %v4505_v30  ;;  %v374_v30 = vld [vmem:[#allocation5 + $0x2a8] sm:$0xff] }
 0x136   :  { %3375 = vmatprep.subr.bf16.mxu1 %v4522_v35  ;;  %v4483_v35 = vcombine.low %v358_v19, %v366_v20  ;;  %v4500_v39 = vcombine.high %v374_v30, %v382_v31  ;;  %v478_v19 = vld [vmem:[#allocation5 + $0x5e8] sm:$0xff] }
 0x137   :  { %3675 = vmatpush1.bf16.msra.mxu0 %v4879_v37  ;;  %v529_v37 = vld [vmem:[#allocation5 + $0x780] sm:$0xff] }
 0x138   :  { %3676 = vmatprep.subr.bf16.mxu0 %v4896_v16  ;;  %v4633_v16 = vcombine.low %v513_v23, %v521_v25  ;;  %v4650_v42 = vcombine.high %v529_v37, %v537_v24  ;;  %v633_v23 = vld [vmem:[#allocation5 + $0xac0] sm:$0xff] }
 0x139   :  { %3376 = vmatpush1.bf16.msra.mxu1 %v4521_v40  ;;  %v390_v40 = vld [vmem:[#allocation5 + $0x328] sm:$0xff] }
 0x13a   :  { %3377 = vmatprep.subr.bf16.mxu1 %v4538_v43  ;;  %v4499_v43 = vcombine.low %v374_v30, %v382_v31  ;;  %v4516_v46 = vcombine.high %v390_v40, %v398_v41  ;;  %v494_v30 = vld [vmem:[#allocation5 + $0x668] sm:$0xff] }
 0x13b   :  { %3677 = vmatpush1.bf16.msra.mxu0 %v4895_v44  ;;  %v545_v44 = vld [vmem:[#allocation5 + $0x800] sm:$0xff] }
 0x13c   :  { %3678 = vmatprep.subr.bf16.mxu0 %v4912_v47  ;;  %v4649_v47 = vcombine.low %v529_v37, %v537_v24  ;;  %v4666_v51 = vcombine.high %v545_v44, %v553_v45  ;;  %v649_v37 = vld [vmem:[#allocation5 + $0xb40] sm:$0xff] }
 0x13d   :  { %3378 = vmatpush1.bf16.msra.mxu1 %v4537_v48  ;;  %v406_v48 = vld [vmem:[#allocation5 + $0x3a8] sm:$0xff] }
 0x13e   :  { %3379 = vmatprep.subr.bf16.mxu1 %v4554_v52  ;;  %v4515_v52 = vcombine.low %v390_v40, %v398_v41  ;;  %v4532_v28 = vcombine.high %v406_v48, %v414_v49  ;;  %v510_v40 = vld [vmem:[#allocation5 + $0x6e8] sm:$0xff] }
 0x13f   :  { %3679 = vmatpush1.bf16.msra.mxu0 %v4911_v53  ;;  %v561_v53 = vld [vmem:[#allocation5 + $0x880] sm:$0xff] }
 0x140   :  { %3771 = vmatprep.subr.bf16.mxu0 %v4420_v29  ;;  %v4665_v29 = vcombine.low %v545_v44, %v553_v45  ;;  %v4682_v57 = vcombine.high %v561_v53, %v569_v54  ;;  %v665_v44 = vld [vmem:[#allocation5 + $0xbc0] sm:$0xff] }
 0x141   :  { %3380 = vmatpush1.bf16.msra.mxu1 %v4553_v55  ;;  %v422_v55 = vld [vmem:[#allocation5 + $0x428] sm:$0xff] }
 0x142   :  { %3381 = vmatprep.subr.bf16.mxu1 %v4570_v62  ;;  %4952 = vmatmul.mubr.msk.bf16.vlgmr.msra.gmra.mrb[8].mxu0 %vm5426_vm9, %v5278_v34  ;;  %v4531_v62 = vcombine.low %v406_v48, %v414_v49  ;;  %v4548_v59 = vcombine.high %v422_v55, %v430_v56  ;;  %v526_v48 = vld [vmem:[#allocation5 + $0x768] sm:$0xff] }
 0x143   :  { %3772 = vmatpush1.bf16.msra.mxu0 %v4419_v63  ;;  %4962 = vmatprep.mubr.msk.bf16.mxu0 %vm5380_vm3, %v5278_v34  ;;  %v577_v63 = vld [vmem:[#allocation5 + $0x900] sm:$0xff] }
 0x144   :  { %3773 = vmatprep.subr.bf16.mxu0 %v4436_v60  ;;  %v4681_v60 = vcombine.low %v561_v53, %v569_v54  ;;  %v4698_v2 = vcombine.high %v577_v63, %v585_v4  ;;  %v681_v53 = vld [vmem:[#allocation5 + $0xc40] sm:$0xff] }
 0x145   :  { %3382 = vmatpush1.bf16.msra.mxu1 %v4569_v61  ;;  %v438_v61 = vld [vmem:[#allocation5 + $0x4a8] sm:$0xff] }
 0x146   :  { %3383 = vmatprep.subr.bf16.mxu1 %v4586_v3  ;;  %v4547_v3 = vcombine.low %v422_v55, %v430_v56  ;;  %v4564_v14 = vcombine.high %v438_v61, %v446_v1  ;;  %v542_v55 = vld [vmem:[#allocation5 + $0x7e8] sm:$0xff] }
 0x147   :  { %3774 = vmatpush1.bf16.msra.mxu0 %v4435_v5  ;;  %v593_v5 = vld [vmem:[#allocation5 + $0x980] sm:$0xff] }
 0x148   :  { %3775 = vmatprep.subr.bf16.mxu0 %v4452_v6  ;;  %v4697_v6 = vcombine.low %v577_v63, %v585_v4  ;;  %v4714_v9 = vcombine.high %v593_v5, %v601_v12  ;;  %v697_v63 = vld [vmem:[#allocation5 + $0xcc0] sm:$0xff] }
 0x149   :  { %3384 = vmatpush1.bf16.msra.mxu1 %v4585_v7  ;;  %v454_v7 = vld [vmem:[#allocation5 + $0x528] sm:$0xff] }
 0x14a   :  { %3385 = vmatprep.subr.bf16.mxu1 %v4602_v10  ;;  %v4563_v10 = vcombine.low %v438_v61, %v446_v1  ;;  %v4580_v15 = vcombine.high %v454_v7, %v462_v8  ;;  %v558_v61 = vld [vmem:[#allocation5 + $0x868] sm:$0xff] }
 0x14b   :  { %3776 = vmatpush1.bf16.msra.mxu0 %v4451_v11  ;;  %v609_v11 = vld [vmem:[#allocation5 + $0xa00] sm:$0xff] }
 0x14c   :  { %3777 = vmatprep.subr.bf16.mxu0 %v4468_v17  ;;  %v4713_v17 = vcombine.low %v593_v5, %v601_v12  ;;  %v4730_v20 = vcombine.high %v609_v11, %v617_v13  ;;  %v713_v5 = vld [vmem:[#allocation5 + $0xd40] sm:$0xff] }
 0x14d   :  { %3386 = vmatpush1.bf16.msra.mxu1 %v4601_v18  ;;  %v470_v18 = vld [vmem:[#allocation5 + $0x5a8] sm:$0xff] }
 0x14e   :  { %3387 = vmatprep.subr.bf16.mxu1 %v4618_v21  ;;  %v4579_v21 = vcombine.low %v454_v7, %v462_v8  ;;  %v4596_v25 = vcombine.high %v470_v18, %v478_v19  ;;  %v574_v7 = vld [vmem:[#allocation5 + $0x8e8] sm:$0xff] }
 0x14f   :  { %3778 = vmatpush1.bf16.msra.mxu0 %v4467_v22  ;;  %v625_v22 = vld [vmem:[#allocation5 + $0xa80] sm:$0xff] }
 0x150   :  { %3779 = vmatprep.subr.bf16.mxu0 %v4484_v26  ;;  %v4729_v26 = vcombine.low %v609_v11, %v617_v13  ;;  %v4746_v31 = vcombine.high %v625_v22, %v633_v23  ;;  %v729_v11 = vld [vmem:[#allocation5 + $0xdc0] sm:$0xff] }
 0x151   :  { %3388 = vmatpush1.bf16.msra.mxu1 %v4617_v27  ;;  %v486_v27 = vld [vmem:[#allocation5 + $0x628] sm:$0xff] }
 0x152   :  { %3389 = vmatprep.subr.bf16.mxu1 %v4634_v33  ;;  %v4595_v33 = vcombine.low %v470_v18, %v478_v19  ;;  %v4612_v24 = vcombine.high %v486_v27, %v494_v30  ;;  %v590_v18 = vld [vmem:[#allocation5 + $0x968] sm:$0xff] }
 0x153   :  { %3780 = vmatpush1.bf16.msra.mxu0 %v4483_v35  ;;  %v641_v35 = vld [vmem:[#allocation5 + $0xb00] sm:$0xff] }
 0x154   :  { %3781 = vmatprep.subr.bf16.mxu0 %v4500_v39  ;;  %v4745_v39 = vcombine.low %v625_v22, %v633_v23  ;;  %v4762_v41 = vcombine.high %v641_v35, %v649_v37  ;;  %v745_v22 = vld [vmem:[#allocation5 + $0xe40] sm:$0xff] }
 0x155   :  { %3390 = vmatpush1.bf16.msra.mxu1 %v4633_v16  ;;  %v502_v16 = vld [vmem:[#allocation5 + $0x6a8] sm:$0xff] }
 0x156   :  { %3391 = vmatprep.subr.bf16.mxu1 %v4650_v42  ;;  %v4611_v42 = vcombine.low %v486_v27, %v494_v30  ;;  %v4628_v45 = vcombine.high %v502_v16, %v510_v40  ;;  %v606_v27 = vld [vmem:[#allocation5 + $0x9e8] sm:$0xff] }
 0x157   :  { %3782 = vmatpush1.bf16.msra.mxu0 %v4499_v43  ;;  %v657_v43 = vld [vmem:[#allocation5 + $0xb80] sm:$0xff] }
 0x158   :  { %3783 = vmatprep.subr.bf16.mxu0 %v4516_v46  ;;  %v4761_v46 = vcombine.low %v641_v35, %v649_v37  ;;  %v4778_v49 = vcombine.high %v657_v43, %v665_v44  ;;  %v761_v35 = vld [vmem:[#allocation5 + $0xec0] sm:$0xff] }
 0x159   :  { %3392 = vmatpush1.bf16.msra.mxu1 %v4649_v47  ;;  %v518_v47 = vld [vmem:[#allocation5 + $0x728] sm:$0xff] }
 0x15a   :  { %3402 = vmatprep.subr.bf16.mxu1 %v4666_v51  ;;  %v4627_v51 = vcombine.low %v502_v16, %v510_v40  ;;  %v4644_v54 = vcombine.high %v518_v47, %v526_v48  ;;  %v622_v16 = vld [vmem:[#allocation5 + $0xa68] sm:$0xff] }
 0x15b   :  { %3784 = vmatpush1.bf16.msra.mxu0 %v4515_v52  ;;  %v673_v52 = vld [vmem:[#allocation5 + $0xc00] sm:$0xff] }
 0x15c   :  { %4924 = vmatmul.mubr.msk.bf16.vlgmr.msra.gmra.mrb[4].mxu1 %vm5397_vm7, %v5278_v34  ;;  %3785 = vmatprep.subr.bf16.mxu0 %v4532_v28  ;;  %v4777_v28 = vcombine.low %v657_v43, %v665_v44  ;;  %v4794_v56 = vcombine.high %v673_v52, %v681_v53  ;;  %v777_v43 = vld [vmem:[#allocation5 + $0xf40] sm:$0xff] }
 0x15d   :  { %3403 = vmatpush1.bf16.msra.mxu1 %v4665_v29  ;;  %4926 = vmatprep.mubr.msk.bf16.mxu1 %vm5401_vm8, %v5278_v34  ;;  %v534_v29 = vld [vmem:[#allocation5 + $0x7a8] sm:$0xff] }
 0x15e   :  { %3404 = vmatprep.subr.bf16.mxu1 %v4682_v57  ;;  %v4643_v57 = vcombine.low %v518_v47, %v526_v48  ;;  %v4660_v4 = vcombine.high %v534_v29, %v542_v55  ;;  %v638_v47 = vld [vmem:[#allocation5 + $0xae8] sm:$0xff] }
 0x15f   :  { %3786 = vmatpush1.bf16.msra.mxu0 %v4531_v62  ;;  %v689_v62 = vld [vmem:[#allocation5 + $0xc80] sm:$0xff] }
 0x160   :  { %3787 = vmatprep.subr.bf16.mxu0 %v4548_v59  ;;  %v4793_v59 = vcombine.low %v673_v52, %v681_v53  ;;  %v4810_v1 = vcombine.high %v689_v62, %v697_v63  ;;  %v793_v52 = vld [vmem:[#allocation5 + $0xfc0] sm:$0xff] }
 0x161   :  { %3405 = vmatpush1.bf16.msra.mxu1 %v4681_v60  ;;  %v550_v60 = vld [vmem:[#allocation5 + $0x828] sm:$0xff] }
 0x162   :  { %3406 = vmatprep.subr.bf16.mxu1 %v4698_v2  ;;  %v4659_v2 = vcombine.low %v534_v29, %v542_v55  ;;  %v4676_v12 = vcombine.high %v550_v60, %v558_v61  ;;  %v654_v29 = vld [vmem:[#allocation5 + $0xb68] sm:$0xff] }
 0x163   :  { %3788 = vmatpush1.bf16.msra.mxu0 %v4547_v3  ;;  %v705_v3 = vld [vmem:[#allocation5 + $0xd00] sm:$0xff] }
 0x164   :  { %3789 = vmatprep.subr.bf16.mxu0 %v4564_v14  ;;  %v4809_v14 = vcombine.low %v689_v62, %v697_v63  ;;  %v4826_v8 = vcombine.high %v705_v3, %v713_v5  ;;  %v299_v62 = vld [vmem:[#allocation5 + $0x50] sm:$0xff] }
 0x165   :  { %3407 = vmatpush1.bf16.msra.mxu1 %v4697_v6  ;;  %v566_v6 = vld [vmem:[#allocation5 + $0x8a8] sm:$0xff] }
 0x166   :  { %3408 = vmatprep.subr.bf16.mxu1 %v4714_v9  ;;  %v4675_v9 = vcombine.low %v550_v60, %v558_v61  ;;  %v4692_v13 = vcombine.high %v566_v6, %v574_v7  ;;  %v670_v60 = vld [vmem:[#allocation5 + $0xbe8] sm:$0xff] }
 0x167   :  { %3790 = vmatpush1.bf16.msra.mxu0 %v4563_v10  ;;  %v721_v10 = vld [vmem:[#allocation5 + $0xd80] sm:$0xff] }
 0x168   :  { %3791 = vmatprep.subr.bf16.mxu0 %v4580_v15  ;;  %v4825_v15 = vcombine.low %v705_v3, %v713_v5  ;;  %v4842_v19 = vcombine.high %v721_v10, %v729_v11  ;;  %v315_v3 = vld [vmem:[#allocation5 + $0xd0] sm:$0xff] }
 0x169   :  { %3409 = vmatpush1.bf16.msra.mxu1 %v4713_v17  ;;  %v582_v17 = vld [vmem:[#allocation5 + $0x928] sm:$0xff] }
 0x16a   :  { %3410 = vmatprep.subr.bf16.mxu1 %v4730_v20  ;;  %v4691_v20 = vcombine.low %v566_v6, %v574_v7  ;;  %v4708_v23 = vcombine.high %v582_v17, %v590_v18  ;;  %v686_v6 = vld [vmem:[#allocation5 + $0xc68] sm:$0xff] }
 0x16b   :  { %3792 = vmatpush1.bf16.msra.mxu0 %v4579_v21  ;;  %v737_v21 = vld [vmem:[#allocation5 + $0xe00] sm:$0xff] }
 0x16c   :  { %3793 = vmatprep.subr.bf16.mxu0 %v4596_v25  ;;  %v4841_v25 = vcombine.low %v721_v10, %v729_v11  ;;  %v4858_v30 = vcombine.high %v737_v21, %v745_v22  ;;  %v331_v10 = vld [vmem:[#allocation5 + $0x150] sm:$0xff] }
 0x16d   :  { %3411 = vmatpush1.bf16.msra.mxu1 %v4729_v26  ;;  %v598_v26 = vld [vmem:[#allocation5 + $0x9a8] sm:$0xff] }
 0x16e   :  { %3412 = vmatprep.subr.bf16.mxu1 %v4746_v31  ;;  %v4707_v31 = vcombine.low %v582_v17, %v590_v18  ;;  %v4724_v37 = vcombine.high %v598_v26, %v606_v27  ;;  %v702_v17 = vld [vmem:[#allocation5 + $0xce8] sm:$0xff] }
 0x16f   :  { %3794 = vmatpush1.bf16.msra.mxu0 %v4595_v33  ;;  %v753_v33 = vld [vmem:[#allocation5 + $0xe80] sm:$0xff] }
 0x170   :  { %3795 = vmatprep.subr.bf16.mxu0 %v4612_v24  ;;  %v4857_v24 = vcombine.low %v737_v21, %v745_v22  ;;  %v4874_v40 = vcombine.high %v753_v33, %v761_v35  ;;  %v347_v21 = vld [vmem:[#allocation5 + $0x1d0] sm:$0xff] }
 0x171   :  { %3413 = vmatpush1.bf16.msra.mxu1 %v4745_v39  ;;  %v614_v39 = vld [vmem:[#allocation5 + $0xa28] sm:$0xff] }
 0x172   :  { %3414 = vmatprep.subr.bf16.mxu1 %v4762_v41  ;;  %v4723_v41 = vcombine.low %v598_v26, %v606_v27  ;;  %v4740_v44 = vcombine.high %v614_v39, %v622_v16  ;;  %v718_v26 = vld [vmem:[#allocation5 + $0xd68] sm:$0xff] }
 0x173   :  { %3796 = vmatpush1.bf16.msra.mxu0 %v4611_v42  ;;  %v769_v42 = vld [vmem:[#allocation5 + $0xf00] sm:$0xff] }
 0x174   :  { %3797 = vmatprep.subr.bf16.mxu0 %v4628_v45  ;;  %v4873_v45 = vcombine.low %v753_v33, %v761_v35  ;;  %v4890_v48 = vcombine.high %v769_v42, %v777_v43  ;;  %v363_v33 = vld [vmem:[#allocation5 + $0x250] sm:$0xff] }
 0x175   :  { %3415 = vmatpush1.bf16.msra.mxu1 %v4761_v46  ;;  %v630_v46 = vld [vmem:[#allocation5 + $0xaa8] sm:$0xff] }
 0x176   :  { %3416 = vmatprep.subr.bf16.mxu1 %v4778_v49  ;;  %v4739_v49 = vcombine.low %v614_v39, %v622_v16  ;;  %v4756_v53 = vcombine.high %v630_v46, %v638_v47  ;;  %v734_v39 = vld [vmem:[#allocation5 + $0xde8] sm:$0xff] }
 0x177   :  { %3798 = vmatpush1.bf16.msra.mxu0 %v4627_v51  ;;  %v785_v51 = vld [vmem:[#allocation5 + $0xf80] sm:$0xff] }
 0x178   :  { %3799 = vmatprep.subr.bf16.mxu0 %v4644_v54  ;;  %v4889_v54 = vcombine.low %v769_v42, %v777_v43  ;;  %v4906_v55 = vcombine.high %v785_v51, %v793_v52  ;;  %v379_v42 = vld [vmem:[#allocation5 + $0x2d0] sm:$0xff] }
 0x179   :  { %3417 = vmatpush1.bf16.msra.mxu1 %v4777_v28  ;;  %v646_v28 = vld [vmem:[#allocation5 + $0xb28] sm:$0xff] }
 0x17a   :  { %3418 = vmatprep.subr.bf16.mxu1 %v4794_v56  ;;  %v4755_v56 = vcombine.low %v630_v46, %v638_v47  ;;  %v4772_v63 = vcombine.high %v646_v28, %v654_v29  ;;  %v750_v46 = vld [vmem:[#allocation5 + $0xe68] sm:$0xff] }
 0x17b   :  { %3800 = vmatpush1.bf16.msra.mxu0 %v4643_v57  ;;  %v291_v57 = vld [vmem:[#allocation5 + $0x10] sm:$0xff] }
 0x17c   :  { %3801 = vmatprep.subr.bf16.mxu0 %v4660_v4  ;;  %v4905_v4 = vcombine.low %v785_v51, %v793_v52  ;;  %v4414_v61 = vcombine.high %v291_v57, %v299_v62  ;;  %v395_v51 = vld [vmem:[#allocation5 + $0x350] sm:$0xff] }
 0x17d   :  { %3419 = vmatpush1.bf16.msra.mxu1 %v4793_v59  ;;  %v662_v59 = vld [vmem:[#allocation5 + $0xba8] sm:$0xff] }
 0x17e   :  { %3420 = vmatprep.subr.bf16.mxu1 %v4810_v1  ;;  %v4771_v1 = vcombine.low %v646_v28, %v654_v29  ;;  %v4788_v5 = vcombine.high %v662_v59, %v670_v60  ;;  %v766_v28 = vld [vmem:[#allocation5 + $0xee8] sm:$0xff] }
 0x17f   :  { %3802 = vmatpush1.bf16.msra.mxu0 %v4659_v2  ;;  %v307_v2 = vld [vmem:[#allocation5 + $0x90] sm:$0xff] }
 0x180   :  { %3812 = vmatprep.subr.bf16.mxu0 %v4676_v12  ;;  %v4413_v12 = vcombine.low %v291_v57, %v299_v62  ;;  %v4430_v7 = vcombine.high %v307_v2, %v315_v3  ;;  %v403_v62 = vld [vmem:[#allocation5 + $0x390] sm:$0xff] }
 0x181   :  { %3421 = vmatpush1.bf16.msra.mxu1 %v4809_v14  ;;  %v678_v14 = vld [vmem:[#allocation5 + $0xc28] sm:$0xff] }
 0x182   :  { %3422 = vmatprep.subr.bf16.mxu1 %v4826_v8  ;;  %4964 = vmatmul.mubr.msk.bf16.vlgmr.msra.gmra.mrb[12].mxu0 %vm5397_vm7, %v5278_v34  ;;  %v4787_v8 = vcombine.low %v662_v59, %v670_v60  ;;  %v4804_v11 = vcombine.high %v678_v14, %v686_v6 }
 0x183   :  { %3813 = vmatpush1.bf16.msra.mxu0 %v4675_v9  ;;  %4966 = vmatprep.mubr.msk.bf16.mxu0 %vm5401_vm8, %v5278_v34  ;;  %v323_v9 = vld [vmem:[#allocation5 + $0x110] sm:$0xff] }
 0x184   :  { %3814 = vmatprep.subr.bf16.mxu0 %v4692_v13  ;;  %v4429_v13 = vcombine.low %v307_v2, %v315_v3  ;;  %v4446_v18 = vcombine.high %v323_v9, %v331_v10  ;;  %v782_v2 = vld [vmem:[#allocation5 + $0xf68] sm:$0xff] }
 0x185   :  { %3423 = vmatpush1.bf16.msra.mxu1 %v4825_v15  ;;  %v694_v15 = vld [vmem:[#allocation5 + $0xca8] sm:$0xff] }
 0x186   :  { %3424 = vmatprep.subr.bf16.mxu1 %v4842_v19  ;;  %v4803_v19 = vcombine.low %v678_v14, %v686_v6  ;;  %v4820_v22 = vcombine.high %v694_v15, %v702_v17  ;;  %v427_v14 = vld [vmem:[#allocation5 + $0x450] sm:$0xff] }
 0x187   :  { %3815 = vmatpush1.bf16.msra.mxu0 %v4691_v20  ;;  %v339_v20 = vld [vmem:[#allocation5 + $0x190] sm:$0xff] }
 0x188   :  { %3816 = vmatprep.subr.bf16.mxu0 %v4708_v23  ;;  %v4445_v23 = vcombine.low %v323_v9, %v331_v10  ;;  %v4462_v27 = vcombine.high %v339_v20, %v347_v21  ;;  %v798_v9 = vld [vmem:[#allocation5 + $0xfe8] sm:$0xff] }
 0x189   :  { %3425 = vmatpush1.bf16.msra.mxu1 %v4841_v25  ;;  %v710_v25 = vld [vmem:[#allocation5 + $0xd28] sm:$0xff] }
 0x18a   :  { %3426 = vmatprep.subr.bf16.mxu1 %v4858_v30  ;;  %v4819_v30 = vcombine.low %v694_v15, %v702_v17  ;;  %v4836_v35 = vcombine.high %v710_v25, %v718_v26  ;;  %v443_v15 = vld [vmem:[#allocation5 + $0x4d0] sm:$0xff] }
 0x18b   :  { %3817 = vmatpush1.bf16.msra.mxu0 %v4707_v31  ;;  %v355_v31 = vld [vmem:[#allocation5 + $0x210] sm:$0xff] }
 0x18c   :  { %3818 = vmatprep.subr.bf16.mxu0 %v4724_v37  ;;  %v4461_v37 = vcombine.low %v339_v20, %v347_v21  ;;  %v4478_v16 = vcombine.high %v355_v31, %v363_v33  ;;  %v304_v20 = vld [vmem:[#allocation5 + $0x78] sm:$0xff] }
 0x18d   :  { %3427 = vmatpush1.bf16.msra.mxu1 %v4857_v24  ;;  %v726_v24 = vld [vmem:[#allocation5 + $0xda8] sm:$0xff] }
 0x18e   :  { %3428 = vmatprep.subr.bf16.mxu1 %v4874_v40  ;;  %v4835_v40 = vcombine.low %v710_v25, %v718_v26  ;;  %v4852_v43 = vcombine.high %v726_v24, %v734_v39  ;;  %v459_v25 = vld [vmem:[#allocation5 + $0x550] sm:$0xff] }
 0x18f   :  { %3819 = vmatpush1.bf16.msra.mxu0 %v4723_v41  ;;  %v371_v41 = vld [vmem:[#allocation5 + $0x290] sm:$0xff] }
 0x190   :  { %3820 = vmatprep.subr.bf16.mxu0 %v4740_v44  ;;  %v4477_v44 = vcombine.low %v355_v31, %v363_v33  ;;  %v4494_v47 = vcombine.high %v371_v41, %v379_v42  ;;  %v320_v31 = vld [vmem:[#allocation5 + $0xf8] sm:$0xff] }
 0x191   :  { %3429 = vmatpush1.bf16.msra.mxu1 %v4873_v45  ;;  %v742_v45 = vld [vmem:[#allocation5 + $0xe28] sm:$0xff] }
 0x192   :  { %3430 = vmatprep.subr.bf16.mxu1 %v4890_v48  ;;  %v4851_v48 = vcombine.low %v726_v24, %v734_v39  ;;  %v4868_v52 = vcombine.high %v742_v45, %v750_v46  ;;  %v4867_v57 = vcombine.low %v742_v45, %v750_v46  ;;  %v475_v24 = vld [vmem:[#allocation5 + $0x5d0] sm:$0xff] }
 0x193   :  { %3821 = vmatpush1.bf16.msra.mxu0 %v4739_v49  ;;  %v387_v49 = vld [vmem:[#allocation5 + $0x310] sm:$0xff] }
 0x194   :  { %3822 = vmatprep.subr.bf16.mxu0 %v4756_v53  ;;  %v4493_v53 = vcombine.low %v371_v41, %v379_v42  ;;  %v336_v41 = vld [vmem:[#allocation5 + $0x178] sm:$0xff]  ;;  %v491_v45 = vld [vmem:[#allocation5 + $0x650] sm:$0xff] }
 0x195   :  { %3431 = vmatpush1.bf16.msra.mxu1 %v4889_v54  ;;  %v758_v54 = vld [vmem:[#allocation5 + $0xea8] sm:$0xff]  ;;  %v5478_v29 = vpop.f32.mrb[4].mxu0 }
 0x196   :  { %3432 = vmatprep.subr.bf16.mxu1 %v4906_v55  ;;  %v4510_v55 = vcombine.high %v387_v49, %v395_v51  ;;  %v4884_v59 = vcombine.high %v758_v54, %v766_v28 }
 0x197   :  { %3823 = vmatpush1.bf16.msra.mxu0 %v4755_v56  ;;  %v5480_v56 = vpop.f32.mrb[5].mxu0 }
 0x198   :  { %3824 = vmatprep.subr.bf16.mxu0 %v4772_v63  ;;  %v411_v63 = vld [vmem:[#allocation5 + $0x3d0] sm:$0xff] }
 0x199   :  { %3433 = vmatpush1.bf16.msra.mxu1 %v4905_v4  ;;  %v3522_v4 = vpop.f32.mrb[6].mxu0  ;;  %v4526_v3 = vcombine.high %v403_v62, %v411_v63 }
 0x19a   :  { %3525 = vmatprep.subr.bf16.mxu1 %v4414_v61  ;;  %v3523_v60 = vpop.f32.mrb[7].mxu0  ;;  %v4509_v61 = vcombine.low %v387_v49, %v395_v51  ;;  %v352_v49 = vld [vmem:[#allocation5 + $0x1f8] sm:$0xff] }
 0x19b   :  { %3825 = vmatpush1.bf16.msra.mxu0 %v4771_v1  ;;  %v774_v1 = vld [vmem:[#allocation5 + $0xf28] sm:$0xff]  ;;  %v523_v60 = vld [vmem:[#allocation5 + $0x750] sm:$0xff] }
 0x19c   :  { %4928 = vmatmul.mubr.msk.bf16.vlgmr.msra.gmra.mrb[4].mxu1 %vm5426_vm9, %v5278_v34  ;;  %3826 = vmatprep.subr.bf16.mxu0 %v4788_v5  ;;  %v4883_v5 = vcombine.low %v758_v54, %v766_v28  ;;  %v4900_v6 = vcombine.high %v774_v1, %v782_v2  ;;  %v507_v54 = vld [vmem:[#allocation5 + $0x6d0] sm:$0xff] }
 0x19d   :  { %3526 = vmatpush1.bf16.msra.mxu1 %v4413_v12  ;;  %4938 = vmatprep.mubr.msk.bf16.mxu1 %vm5380_vm3, %v5278_v34  ;;  %v419_v12 = vld [vmem:[#allocation5 + $0x410] sm:$0xff] }
 0x19e   :  { %3527 = vmatprep.subr.bf16.mxu1 %v4430_v7  ;;  %v4525_v7 = vcombine.low %v403_v62, %v411_v63  ;;  %v4542_v10 = vcombine.high %v419_v12, %v427_v14  ;;  %v368_v62 = vld [vmem:[#allocation5 + $0x278] sm:$0xff] }
 0x19f   :  { %3827 = vmatpush1.bf16.msra.mxu0 %v4787_v8  ;;  %v790_v8 = vld [vmem:[#allocation5 + $0xfa8] sm:$0xff] }
 0x1a0   :  { %3828 = vmatprep.subr.bf16.mxu0 %v4804_v11  ;;  %v4899_v11 = vcombine.low %v774_v1, %v782_v2  ;;  %v4916_v17 = vcombine.high %v790_v8, %v798_v9  ;;  %v376_v2 = vld [vmem:[#allocation5 + $0x2b8] sm:$0xff] }
 0x1a1   :  { %3528 = vmatpush1.bf16.msra.mxu1 %v4429_v13  ;;  %v435_v13 = vld [vmem:[#allocation5 + $0x490] sm:$0xff] }
 0x1a2   :  { %3529 = vmatprep.subr.bf16.mxu1 %v4446_v18  ;;  %v4541_v18 = vcombine.low %v419_v12, %v427_v14  ;;  %v4558_v21 = vcombine.high %v435_v13, %v443_v15  ;;  %v531_v14 = vld [vmem:[#allocation5 + $0x790] sm:$0xff] }
 0x1a3   :  { %3829 = vmatpush1.bf16.msra.mxu0 %v4803_v19  ;;  %v296_v19 = vld [vmem:[#allocation5 + $0x38] sm:$0xff] }
 0x1a4   :  { %3830 = vmatprep.subr.bf16.mxu0 %v4820_v22  ;;  %v4915_v22 = vcombine.low %v790_v8, %v798_v9  ;;  %v4424_v26 = vcombine.high %v296_v19, %v304_v20  ;;  %v392_v9 = vld [vmem:[#allocation5 + $0x338] sm:$0xff] }
 0x1a5   :  { %3530 = vmatpush1.bf16.msra.mxu1 %v4445_v23  ;;  %v451_v23 = vld [vmem:[#allocation5 + $0x510] sm:$0xff] }
 0x1a6   :  { %3531 = vmatprep.subr.bf16.mxu1 %v4462_v27  ;;  %v4557_v27 = vcombine.low %v435_v13, %v443_v15  ;;  %v4574_v33 = vcombine.high %v451_v23, %v459_v25  ;;  %v547_v15 = vld [vmem:[#allocation5 + $0x810] sm:$0xff] }
 0x1a7   :  { %3831 = vmatpush1.bf16.msra.mxu0 %v4819_v30  ;;  %v312_v30 = vld [vmem:[#allocation5 + $0xb8] sm:$0xff] }
 0x1a8   :  { %3832 = vmatprep.subr.bf16.mxu0 %v4836_v35  ;;  %v4423_v35 = vcombine.low %v296_v19, %v304_v20  ;;  %v4440_v39 = vcombine.high %v312_v30, %v320_v31  ;;  %v408_v20 = vld [vmem:[#allocation5 + $0x3b8] sm:$0xff] }
 0x1a9   :  { %3532 = vmatpush1.bf16.msra.mxu1 %v4461_v37  ;;  %v467_v37 = vld [vmem:[#allocation5 + $0x590] sm:$0xff] }
 0x1aa   :  { %3533 = vmatprep.subr.bf16.mxu1 %v4478_v16  ;;  %v4573_v16 = vcombine.low %v451_v23, %v459_v25  ;;  %v4590_v42 = vcombine.high %v467_v37, %v475_v24  ;;  %v563_v25 = vld [vmem:[#allocation5 + $0x890] sm:$0xff] }
 0x1ab   :  { %3833 = vmatpush1.bf16.msra.mxu0 %v4835_v40  ;;  %v328_v40 = vld [vmem:[#allocation5 + $0x138] sm:$0xff] }
 0x1ac   :  { %3834 = vmatprep.subr.bf16.mxu0 %v4852_v43  ;;  %v4439_v43 = vcombine.low %v312_v30, %v320_v31  ;;  %v4456_v46 = vcombine.high %v328_v40, %v336_v41  ;;  %v424_v31 = vld [vmem:[#allocation5 + $0x438] sm:$0xff] }
 0x1ad   :  { %3534 = vmatpush1.bf16.msra.mxu1 %v4477_v44  ;;  %v483_v44 = vld [vmem:[#allocation5 + $0x610] sm:$0xff] }
 0x1ae   :  { %3535 = vmatprep.subr.bf16.mxu1 %v4494_v47  ;;  %v4589_v47 = vcombine.low %v467_v37, %v475_v24  ;;  %v4606_v51 = vcombine.high %v483_v44, %v491_v45  ;;  %v579_v24 = vld [vmem:[#allocation5 + $0x910] sm:$0xff] }
 0x1af   :  { %3835 = vmatpush1.bf16.msra.mxu0 %v4851_v48  ;;  %v344_v48 = vld [vmem:[#allocation5 + $0x1b8] sm:$0xff] }
 0x1b0   :  { %3836 = vmatprep.subr.bf16.mxu0 %v4868_v52  ;;  %v4455_v52 = vcombine.low %v328_v40, %v336_v41  ;;  %v4472_v28 = vcombine.high %v344_v48, %v352_v49  ;;  %v4471_v4 = vcombine.low %v344_v48, %v352_v49  ;;  %v440_v41 = vld [vmem:[#allocation5 + $0x4b8] sm:$0xff] }
 0x1b1   :  { %3536 = vmatpush1.bf16.msra.mxu1 %v4493_v53  ;;  %v499_v53 = vld [vmem:[#allocation5 + $0x690] sm:$0xff]  ;;  %v456_v49 = vld [vmem:[#allocation5 + $0x538] sm:$0xff] }
 0x1b2   :  { %3537 = vmatprep.subr.bf16.mxu1 %v4510_v55  ;;  %v4605_v55 = vcombine.low %v483_v44, %v491_v45  ;;  %v4622_v63 = vcombine.high %v499_v53, %v507_v54  ;;  %v4621_v1 = vcombine.low %v499_v53, %v507_v54  ;;  %v595_v45 = vld [vmem:[#allocation5 + $0x990] sm:$0xff] }
 0x1b3   :  { %3837 = vmatpush1.bf16.msra.mxu0 %v4867_v57  ;;  %v360_v57 = vld [vmem:[#allocation5 + $0x238] sm:$0xff]  ;;  %v611_v54 = vld [vmem:[#allocation5 + $0xa10] sm:$0xff] }
 0x1b4   :  { %3838 = vmatprep.subr.bf16.mxu0 %v4884_v59  ;;  %v515_v59 = vld [vmem:[#allocation5 + $0x710] sm:$0xff]  ;;  %v4487_v12 = vcombine.low %v360_v57, %v368_v62 }
 0x1b5   :  { %3538 = vmatpush1.bf16.msra.mxu1 %v4509_v61  ;;  %v4488_v61 = vcombine.high %v360_v57, %v368_v62  ;;  %v4637_v8 = vcombine.low %v515_v59, %v523_v60  ;;  %v472_v62 = vld [vmem:[#allocation5 + $0x5b8] sm:$0xff] }
 0x1b6   :  { %3539 = vmatprep.subr.bf16.mxu1 %v4526_v3  ;;  %v384_v3 = vld [vmem:[#allocation5 + $0x2f8] sm:$0xff] }
 0x1b7   :  { %3839 = vmatpush1.bf16.msra.mxu0 %v4883_v5  ;;  %v4638_v5 = vcombine.high %v515_v59, %v523_v60  ;;  %v4503_v13 = vcombine.low %v376_v2, %v384_v3  ;;  %v627_v60 = vld [vmem:[#allocation5 + $0xa90] sm:$0xff] }
 0x1b8   :  { %3840 = vmatprep.subr.bf16.mxu0 %v4900_v6  ;;  %v539_v6 = vld [vmem:[#allocation5 + $0x7d0] sm:$0xff] }
 0x1b9   :  { %3540 = vmatpush1.bf16.msra.mxu1 %v4525_v7  ;;  %v4504_v7 = vcombine.high %v376_v2, %v384_v3  ;;  %v4653_v19 = vcombine.low %v531_v14, %v539_v6  ;;  %v488_v3 = vld [vmem:[#allocation5 + $0x638] sm:$0xff] }
 0x1ba   :  { %3541 = vmatprep.subr.bf16.mxu1 %v4542_v10  ;;  %v400_v10 = vld [vmem:[#allocation5 + $0x378] sm:$0xff] }
 0x1bb   :  { %3841 = vmatpush1.bf16.msra.mxu0 %v4899_v11  ;;  %v4654_v11 = vcombine.high %v531_v14, %v539_v6  ;;  %v4519_v23 = vcombine.low %v392_v9, %v400_v10  ;;  %v643_v6 = vld [vmem:[#allocation5 + $0xb10] sm:$0xff] }
 0x1bc   :  { %3842 = vmatprep.subr.bf16.mxu0 %v4916_v17  ;;  %v555_v17 = vld [vmem:[#allocation5 + $0x850] sm:$0xff] }
 0x1bd   :  { %3542 = vmatpush1.bf16.msra.mxu1 %v4541_v18  ;;  %v4520_v18 = vcombine.high %v392_v9, %v400_v10  ;;  %v4669_v30 = vcombine.low %v547_v15, %v555_v17  ;;  %v504_v10 = vld [vmem:[#allocation5 + $0x6b8] sm:$0xff] }
 0x1be   :  { %3543 = vmatprep.subr.bf16.mxu1 %v4558_v21  ;;  %v416_v21 = vld [vmem:[#allocation5 + $0x3f8] sm:$0xff] }
 0x1bf   :  { %3843 = vmatpush1.bf16.msra.mxu0 %v4915_v22  ;;  %v4670_v22 = vcombine.high %v547_v15, %v555_v17  ;;  %v4535_v37 = vcombine.low %v408_v20, %v416_v21 }
 0x1c0   :  { %3935 = vmatprep.subr.bf16.mxu0 %v4424_v26  ;;  %v571_v26 = vld [vmem:[#allocation5 + $0x8d0] sm:$0xff] }
 0x1c1   :  { %3544 = vmatpush1.bf16.msra.mxu1 %v4557_v27  ;;  %v4536_v27 = vcombine.high %v408_v20, %v416_v21  ;;  %v4685_v40 = vcombine.low %v563_v25, %v571_v26 }
 0x1c2   :  { %3545 = vmatprep.subr.bf16.mxu1 %v4574_v33  ;;  %4968 = vmatmul.mubr.msk.bf16.vlgmr.msra.gmra.mrb[12].mxu0 %vm5426_vm9, %v5278_v34  ;;  %v432_v33 = vld [vmem:[#allocation5 + $0x478] sm:$0xff] }
 0x1c3   :  { %3936 = vmatpush1.bf16.msra.mxu0 %v4423_v35  ;;  %4978 = vmatprep.mubr.msk.bf16.mxu0 %vm5380_vm3, %v5278_v34  ;;  %v4686_v35 = vcombine.high %v563_v25, %v571_v26  ;;  %v4551_v44 = vcombine.low %v424_v31, %v432_v33  ;;  %v520_v25 = vld [vmem:[#allocation5 + $0x738] sm:$0xff] }
 0x1c4   :  { %3937 = vmatprep.subr.bf16.mxu0 %v4440_v39  ;;  %v587_v39 = vld [vmem:[#allocation5 + $0x950] sm:$0xff]  ;;  %v528_v26 = vld [vmem:[#allocation5 + $0x778] sm:$0xff] }
 0x1c5   :  { %3546 = vmatpush1.bf16.msra.mxu1 %v4573_v16  ;;  %v4552_v16 = vcombine.high %v424_v31, %v432_v33  ;;  %v4701_v48 = vcombine.low %v579_v24, %v587_v39  ;;  %v675_v33 = vld [vmem:[#allocation5 + $0xc10] sm:$0xff] }
 0x1c6   :  { %3547 = vmatprep.subr.bf16.mxu1 %v4590_v42  ;;  %v448_v42 = vld [vmem:[#allocation5 + $0x4f8] sm:$0xff] }
 0x1c7   :  { %3938 = vmatpush1.bf16.msra.mxu0 %v4439_v43  ;;  %v4702_v43 = vcombine.high %v579_v24, %v587_v39  ;;  %v4567_v53 = vcombine.low %v440_v41, %v448_v42  ;;  %v536_v39 = vld [vmem:[#allocation5 + $0x7b8] sm:$0xff] }
 0x1c8   :  { %3939 = vmatprep.subr.bf16.mxu0 %v4456_v46  ;;  %v603_v46 = vld [vmem:[#allocation5 + $0x9d0] sm:$0xff] }
 0x1c9   :  { %3548 = vmatpush1.bf16.msra.mxu1 %v4589_v47  ;;  %v4568_v47 = vcombine.high %v440_v41, %v448_v42  ;;  %v4717_v57 = vcombine.low %v595_v45, %v603_v46  ;;  %v4647_v41 = vcombine.low %v520_v25, %v528_v26  ;;  %v691_v42 = vld [vmem:[#allocation5 + $0xc90] sm:$0xff] }
 0x1ca   :  { %3549 = vmatprep.subr.bf16.mxu1 %v4606_v51  ;;  %v464_v51 = vld [vmem:[#allocation5 + $0x578] sm:$0xff] }
 0x1cb   :  { %3940 = vmatpush1.bf16.msra.mxu0 %v4455_v52  ;;  %v4718_v52 = vcombine.high %v595_v45, %v603_v46  ;;  %v4583_v59 = vcombine.low %v456_v49, %v464_v51  ;;  %v552_v46 = vld [vmem:[#allocation5 + $0x838] sm:$0xff] }
 0x1cc   :  { %3941 = vmatprep.subr.bf16.mxu0 %v4472_v28  ;;  %v619_v28 = vld [vmem:[#allocation5 + $0xa50] sm:$0xff] }
 0x1cd   :  { %3550 = vmatpush1.bf16.msra.mxu1 %v4605_v55  ;;  %v4584_v55 = vcombine.high %v456_v49, %v464_v51  ;;  %v4733_v2 = vcombine.low %v611_v54, %v619_v28  ;;  %v707_v51 = vld [vmem:[#allocation5 + $0xd10] sm:$0xff] }
 0x1ce   :  { %3551 = vmatprep.subr.bf16.mxu1 %v4622_v63  ;;  %v480_v63 = vld [vmem:[#allocation5 + $0x5f8] sm:$0xff] }
 0x1cf   :  { %3942 = vmatpush1.bf16.msra.mxu0 %v4471_v4  ;;  %v4734_v4 = vcombine.high %v611_v54, %v619_v28  ;;  %v4599_v14 = vcombine.low %v472_v62, %v480_v63  ;;  %v568_v28 = vld [vmem:[#allocation5 + $0x8b8] sm:$0xff] }
 0x1d0   :  { %3943 = vmatprep.subr.bf16.mxu0 %v4488_v61  ;;  %v635_v61 = vld [vmem:[#allocation5 + $0xad0] sm:$0xff] }
 0x1d1   :  { %3552 = vmatpush1.bf16.msra.mxu1 %v4621_v1  ;;  %v4600_v1 = vcombine.high %v472_v62, %v480_v63  ;;  %v4749_v9 = vcombine.low %v627_v60, %v635_v61  ;;  %v723_v63 = vld [vmem:[#allocation5 + $0xd90] sm:$0xff] }
 0x1d2   :  { %3553 = vmatprep.subr.bf16.mxu1 %v4638_v5  ;;  %v496_v5 = vld [vmem:[#allocation5 + $0x678] sm:$0xff] }
 0x1d3   :  { %3944 = vmatpush1.bf16.msra.mxu0 %v4487_v12  ;;  %v4750_v12 = vcombine.high %v627_v60, %v635_v61  ;;  %v4615_v17 = vcombine.low %v488_v3, %v496_v5  ;;  %v584_v61 = vld [vmem:[#allocation5 + $0x938] sm:$0xff] }
 0x1d4   :  { %3945 = vmatprep.subr.bf16.mxu0 %v4504_v7  ;;  %v651_v7 = vld [vmem:[#allocation5 + $0xb50] sm:$0xff] }
 0x1d5   :  { %3554 = vmatpush1.bf16.msra.mxu1 %v4637_v8  ;;  %v4616_v8 = vcombine.high %v488_v3, %v496_v5  ;;  %v739_v5 = vld [vmem:[#allocation5 + $0xe10] sm:$0xff] }
 0x1d6   :  { %3555 = vmatprep.subr.bf16.mxu1 %v4654_v11  ;;  %v512_v11 = vld [vmem:[#allocation5 + $0x6f8] sm:$0xff] }
 0x1d7   :  { %3946 = vmatpush1.bf16.msra.mxu0 %v4503_v13  ;;  %v4766_v13 = vcombine.high %v643_v6, %v651_v7  ;;  %v4632_v21 = vcombine.high %v504_v10, %v512_v11  ;;  %v4631_v31 = vcombine.low %v504_v10, %v512_v11  ;;  %v755_v11 = vld [vmem:[#allocation5 + $0xe90] sm:$0xff] }
 0x1d8   :  { %3947 = vmatprep.subr.bf16.mxu0 %v4520_v18  ;;  %v659_v18 = vld [vmem:[#allocation5 + $0xb90] sm:$0xff] }
 0x1d9   :  { %3556 = vmatpush1.bf16.msra.mxu1 %v4653_v19  ;;  %v667_v19 = vld [vmem:[#allocation5 + $0xbd0] sm:$0xff] }
 0x1da   :  { %3566 = vmatprep.subr.bf16.mxu1 %v4670_v22  ;;  %v4781_v24 = vcombine.low %v659_v18, %v667_v19 }
 0x1db   :  { %3948 = vmatpush1.bf16.msra.mxu0 %v4519_v23  ;;  %v4765_v23 = vcombine.low %v643_v6, %v651_v7  ;;  %v600_v7 = vld [vmem:[#allocation5 + $0x9b8] sm:$0xff] }
 0x1dc   :  { %4940 = vmatmul.mubr.msk.bf16.vlgmr.msra.gmra.mrb[8].mxu1 %vm5397_vm7, %v5278_v34  ;;  %3949 = vmatprep.subr.bf16.mxu0 %v4536_v27 }
 0x1dd   :  { %3567 = vmatpush1.bf16.msra.mxu1 %v4669_v30  ;;  %4942 = vmatprep.mubr.msk.bf16.mxu1 %vm5401_vm8, %v5278_v34  ;;  %v4782_v30 = vcombine.high %v659_v18, %v667_v19  ;;  %v616_v19 = vld [vmem:[#allocation5 + $0xa38] sm:$0xff] }
 0x1de   :  { %3568 = vmatprep.subr.bf16.mxu1 %v4686_v35  ;;  %v683_v35 = vld [vmem:[#allocation5 + $0xc50] sm:$0xff] }
 0x1df   :  { %3950 = vmatpush1.bf16.msra.mxu0 %v4535_v37  ;;  %v4648_v37 = vcombine.high %v520_v25, %v528_v26  ;;  %v4797_v45 = vcombine.low %v675_v33, %v683_v35  ;;  %v779_v25 = vld [vmem:[#allocation5 + $0xf50] sm:$0xff] }
 0x1e0   :  { %3951 = vmatprep.subr.bf16.mxu0 %v4552_v16  ;;  %v544_v16 = vld [vmem:[#allocation5 + $0x7f8] sm:$0xff] }
 0x1e1   :  { %3569 = vmatpush1.bf16.msra.mxu1 %v4685_v40  ;;  %v4798_v40 = vcombine.high %v675_v33, %v683_v35  ;;  %v4663_v49 = vcombine.low %v536_v39, %v544_v16 }
 0x1e2   :  { %3570 = vmatprep.subr.bf16.mxu1 %v4702_v43  ;;  %v699_v43 = vld [vmem:[#allocation5 + $0xcd0] sm:$0xff] }
 0x1e3   :  { %3952 = vmatpush1.bf16.msra.mxu0 %v4551_v44  ;;  %v4664_v44 = vcombine.high %v536_v39, %v544_v16  ;;  %v4813_v54 = vcombine.low %v691_v42, %v699_v43 }
 0x1e4   :  { %3953 = vmatprep.subr.bf16.mxu0 %v4568_v47  ;;  %v560_v47 = vld [vmem:[#allocation5 + $0x878] sm:$0xff] }
 0x1e5   :  { %3571 = vmatpush1.bf16.msra.mxu1 %v4701_v48  ;;  %v4814_v48 = vcombine.high %v691_v42, %v699_v43  ;;  %v4679_v62 = vcombine.low %v552_v46, %v560_v47 }
 0x1e6   :  { %3572 = vmatprep.subr.bf16.mxu1 %v4718_v52  ;;  %v715_v52 = vld [vmem:[#allocation5 + $0xd50] sm:$0xff] }
 0x1e7   :  { %3954 = vmatpush1.bf16.msra.mxu0 %v4567_v53  ;;  %v4680_v53 = vcombine.high %v552_v46, %v560_v47  ;;  %v4829_v60 = vcombine.low %v707_v51, %v715_v52  ;;  %v4019_v47 = vmax.f32 %v5478_v29, 0.0 }
 0x1e8   :  { %3955 = vmatprep.subr.bf16.mxu0 %v4584_v55  ;;  %v576_v55 = vld [vmem:[#allocation5 + $0x8f8] sm:$0xff] }
 0x1e9   :  { %3573 = vmatpush1.bf16.msra.mxu1 %v4717_v57  ;;  %v4830_v57 = vcombine.high %v707_v51, %v715_v52  ;;  %v4695_v3 = vcombine.low %v568_v28, %v576_v55  ;;  %v672_v51 = vld [vmem:[#allocation5 + $0xbf8] sm:$0xff]  ;;  %v4020_v52 = vmax.f32 %v5480_v56, 0.0 }
 0x1ea   :  { %3574 = vmatprep.subr.bf16.mxu1 %v4734_v4  ;;  %v731_v4 = vld [vmem:[#allocation5 + $0xdd0] sm:$0xff]  ;;  %v688_v56 = vld [vmem:[#allocation5 + $0xc78] sm:$0xff] }
 0x1eb   :  { %3956 = vmatpush1.bf16.msra.mxu0 %v4583_v59  ;;  %v4696_v59 = vcombine.high %v568_v28, %v576_v55  ;;  %v4845_v6 = vcombine.low %v723_v63, %v731_v4 }
 0x1ec   :  { %3957 = vmatprep.subr.bf16.mxu0 %v4600_v1  ;;  %v592_v1 = vld [vmem:[#allocation5 + $0x978] sm:$0xff] }
 0x1ed   :  { %3575 = vmatpush1.bf16.msra.mxu1 %v4733_v2  ;;  %v4846_v2 = vcombine.high %v723_v63, %v731_v4  ;;  %v4711_v10 = vcombine.low %v584_v61, %v592_v1  ;;  %v317_v63 = vld [vmem:[#allocation5 + $0xe0] sm:$0xff] }
 0x1ee   :  { %3576 = vmatprep.subr.bf16.mxu1 %v4750_v12  ;;  %v747_v12 = vld [vmem:[#allocation5 + $0xe50] sm:$0xff] }
 0x1ef   :  { %v5494_v15 = vpop.f32.mrb[0].mxu1  ;;  %3958 = vmatpush1.bf16.msra.mxu0 %v4599_v14  ;;  %v4712_v14 = vcombine.high %v584_v61, %v592_v1  ;;  %v4861_v18 = vcombine.low %v739_v5, %v747_v12 }
 0x1f0   :  { %v5082_v20 = vpop.f32.mrb[1].mxu1  ;;  %3959 = vmatprep.subr.bf16.mxu0 %v4616_v8  ;;  %v608_v8 = vld [vmem:[#allocation5 + $0x9f8] sm:$0xff] }
 0x1f1   :  { %3577 = vmatpush1.bf16.msra.mxu1 %v4749_v9  ;;  %v247_v22 = vpop.f32.mrb[2].mxu1  ;;  %v4862_v9 = vcombine.high %v739_v5, %v747_v12  ;;  %v624_v20 = vld [vmem:[#allocation5 + $0xa78] sm:$0xff] }
 0x1f2   :  { %v5083_v27 = vpop.f32.mrb[3].mxu1  ;;  %3578 = vmatprep.subr.bf16.mxu1 %v4766_v13  ;;  %v763_v13 = vld [vmem:[#allocation5 + $0xed0] sm:$0xff]  ;;  %v4727_v22 = vcombine.low %v600_v7, %v608_v8  ;;  %v4744_v26 = vcombine.high %v616_v19, %v624_v20  ;;  %v4743_v35 = vcombine.low %v616_v19, %v624_v20 }
 0x1f3   :  { %3960 = vmatpush1.bf16.msra.mxu0 %v4615_v17  ;;  %v4728_v17 = vcombine.high %v600_v7, %v608_v8  ;;  %v4877_v27 = vcombine.low %v755_v11, %v763_v13 }
 0x1f4   :  { %3961 = vmatprep.subr.bf16.mxu0 %v4632_v21  ;;  %v4878_v21 = vcombine.high %v755_v11, %v763_v13 }
 0x1f5   :  { %3579 = vmatpush1.bf16.msra.mxu1 %v4765_v23  ;;  %v771_v23 = vld [vmem:[#allocation5 + $0xf10] sm:$0xff] }
 0x1f6   :  { %3580 = vmatprep.subr.bf16.mxu1 %v4782_v30  ;;  %v632_v30 = vld [vmem:[#allocation5 + $0xab8] sm:$0xff]  ;;  %v4894_v33 = vcombine.high %v771_v23, %v779_v25  ;;  %v4893_v16 = vcombine.low %v771_v23, %v779_v25 }
 0x1f7   :  { %3962 = vmatpush1.bf16.msra.mxu0 %v4631_v31  ;;  %v640_v31 = vld [vmem:[#allocation5 + $0xaf8] sm:$0xff] }
 0x1f8   :  { %3963 = vmatprep.subr.bf16.mxu0 %v4648_v37  ;;  %v787_v37 = vld [vmem:[#allocation5 + $0xf90] sm:$0xff]  ;;  %v4760_v39 = vcombine.high %v632_v30, %v640_v31  ;;  %v4759_v43 = vcombine.low %v632_v30, %v640_v31 }
 0x1f9   :  { %3581 = vmatpush1.bf16.msra.mxu1 %v4781_v24  ;;  %v795_v24 = vld [vmem:[#allocation5 + $0xfd0] sm:$0xff] }
 0x1fa   :  { %3582 = vmatprep.subr.bf16.mxu1 %v4798_v40  ;;  %v648_v40 = vld [vmem:[#allocation5 + $0xb38] sm:$0xff]  ;;  %v4910_v42 = vcombine.high %v787_v37, %v795_v24 }
 0x1fb   :  { %3964 = vmatpush1.bf16.msra.mxu0 %v4647_v41  ;;  %v656_v41 = vld [vmem:[#allocation5 + $0xb78] sm:$0xff] }
 0x1fc   :  { %3965 = vmatprep.subr.bf16.mxu0 %v4664_v44  ;;  %v293_v44 = vld [vmem:[#allocation5 + $0x20] sm:$0xff]  ;;  %v4776_v46 = vcombine.high %v648_v40, %v656_v41 }
 0x1fd   :  { %3583 = vmatpush1.bf16.msra.mxu1 %v4797_v45  ;;  %v301_v45 = vld [vmem:[#allocation5 + $0x60] sm:$0xff] }
 0x1fe   :  { %3584 = vmatprep.subr.bf16.mxu1 %v4814_v48  ;;  %v4909_v48 = vcombine.low %v787_v37, %v795_v24  ;;  %v4417_v1 = vcombine.low %v293_v44, %v301_v45 }
 0x1ff   :  { %3966 = vmatpush1.bf16.msra.mxu0 %v4663_v49  ;;  %v664_v49 = vld [vmem:[#allocation5 + $0xbb8] sm:$0xff] }
 0x200   :  { %3976 = vmatprep.subr.bf16.mxu0 %v4680_v53  ;;  %v4791_v12 = vcombine.low %v664_v49, %v672_v51 }
 0x201   :  { %3585 = vmatpush1.bf16.msra.mxu1 %v4813_v54  ;;  %v4418_v54 = vcombine.high %v293_v44, %v301_v45 }
 0x202   :  { %3586 = vmatprep.subr.bf16.mxu1 %v4830_v57  ;;  %4980 = vmatmul.mubr.msk.bf16.vlgmr.msra.gmra.mrb[16].mxu0 %vm5397_vm7, %v5278_v34  ;;  %v4775_v57 = vcombine.low %v648_v40, %v656_v41 }
 0x203   :  { %3977 = vmatpush1.bf16.msra.mxu0 %v4679_v62  ;;  %4982 = vmatprep.mubr.msk.bf16.mxu0 %vm5401_vm8, %v5278_v34  ;;  %v309_v62 = vld [vmem:[#allocation5 + $0xa0] sm:$0xff] }
 0x204   :  { %3978 = vmatprep.subr.bf16.mxu0 %v4696_v59  ;;  %v4434_v5 = vcombine.high %v309_v62, %v317_v63  ;;  %v4433_v8 = vcombine.low %v309_v62, %v317_v63  ;;  %v776_v63 = vld [vmem:[#allocation5 + $0xf38] sm:$0xff] }
 0x205   :  { %3587 = vmatpush1.bf16.msra.mxu1 %v4829_v60  ;;  %v4792_v60 = vcombine.high %v664_v49, %v672_v51  ;;  %v760_v51 = vld [vmem:[#allocation5 + $0xeb8] sm:$0xff] }
 0x206   :  { %3588 = vmatprep.subr.bf16.mxu1 %v4846_v2  ;;  %v680_v2 = vld [vmem:[#allocation5 + $0xc38] sm:$0xff] }
 0x207   :  { %3979 = vmatpush1.bf16.msra.mxu0 %v4695_v3  ;;  %v4808_v7 = vcombine.high %v680_v2, %v688_v56  ;;  %v4807_v13 = vcombine.low %v680_v2, %v688_v56 }
 0x208   :  { %3980 = vmatprep.subr.bf16.mxu0 %v4712_v14  ;;  %v325_v14 = vld [vmem:[#allocation5 + $0x120] sm:$0xff] }
 0x209   :  { %3589 = vmatpush1.bf16.msra.mxu1 %v4845_v6  ;;  %v333_v6 = vld [vmem:[#allocation5 + $0x160] sm:$0xff] }
 0x20a   :  { %3590 = vmatprep.subr.bf16.mxu1 %v4862_v9  ;;  %v696_v9 = vld [vmem:[#allocation5 + $0xcb8] sm:$0xff]  ;;  %v4450_v11 = vcombine.high %v325_v14, %v333_v6  ;;  %v4449_v20 = vcombine.low %v325_v14, %v333_v6 }
 0x20b   :  { %3981 = vmatpush1.bf16.msra.mxu0 %v4711_v10  ;;  %v704_v10 = vld [vmem:[#allocation5 + $0xcf8] sm:$0xff] }
 0x20c   :  { %3982 = vmatprep.subr.bf16.mxu0 %v4728_v17  ;;  %v341_v17 = vld [vmem:[#allocation5 + $0x1a0] sm:$0xff]  ;;  %v4824_v19 = vcombine.high %v696_v9, %v704_v10  ;;  %v4823_v25 = vcombine.low %v696_v9, %v704_v10 }
 0x20d   :  { %3591 = vmatpush1.bf16.msra.mxu1 %v4861_v18  ;;  %v349_v18 = vld [vmem:[#allocation5 + $0x1e0] sm:$0xff] }
 0x20e   :  { %3592 = vmatprep.subr.bf16.mxu1 %v4878_v21  ;;  %v712_v21 = vld [vmem:[#allocation5 + $0xd38] sm:$0xff]  ;;  %v4466_v23 = vcombine.high %v341_v17, %v349_v18  ;;  %v4465_v31 = vcombine.low %v341_v17, %v349_v18  ;;  %v453_v17 = vld [vmem:[#allocation5 + $0x520] sm:$0xff] }
 0x20f   :  { %3983 = vmatpush1.bf16.msra.mxu0 %v4727_v22  ;;  %v720_v22 = vld [vmem:[#allocation5 + $0xd78] sm:$0xff]  ;;  %v461_v18 = vld [vmem:[#allocation5 + $0x560] sm:$0xff] }
 0x210   :  { %3984 = vmatprep.subr.bf16.mxu0 %v4744_v26  ;;  %v357_v26 = vld [vmem:[#allocation5 + $0x220] sm:$0xff]  ;;  %v4840_v30 = vcombine.high %v712_v21, %v720_v22  ;;  %v4839_v24 = vcombine.low %v712_v21, %v720_v22 }
 0x211   :  { %3593 = vmatpush1.bf16.msra.mxu1 %v4877_v27  ;;  %v365_v27 = vld [vmem:[#allocation5 + $0x260] sm:$0xff] }
 0x212   :  { %3594 = vmatprep.subr.bf16.mxu1 %v4894_v33  ;;  %v728_v33 = vld [vmem:[#allocation5 + $0xdb8] sm:$0xff]  ;;  %v4482_v37 = vcombine.high %v357_v26, %v365_v27  ;;  %v4481_v41 = vcombine.low %v357_v26, %v365_v27  ;;  %v469_v21 = vld [vmem:[#allocation5 + $0x5a0] sm:$0xff] }
 0x213   :  { %3985 = vmatpush1.bf16.msra.mxu0 %v4743_v35  ;;  %v736_v35 = vld [vmem:[#allocation5 + $0xdf8] sm:$0xff]  ;;  %v477_v22 = vld [vmem:[#allocation5 + $0x5e0] sm:$0xff] }
 0x214   :  { %3986 = vmatprep.subr.bf16.mxu0 %v4760_v39  ;;  %v373_v39 = vld [vmem:[#allocation5 + $0x2a0] sm:$0xff]  ;;  %v4856_v40 = vcombine.high %v728_v33, %v736_v35  ;;  %v4855_v45 = vcombine.low %v728_v33, %v736_v35 }
 0x215   :  { %3595 = vmatpush1.bf16.msra.mxu1 %v4893_v16  ;;  %v3682_v53 = vpop.f32.mrb[8].mxu0  ;;  %v381_v16 = vld [vmem:[#allocation5 + $0x2e0] sm:$0xff] }
 0x216   :  { %3596 = vmatprep.subr.bf16.mxu1 %v4910_v42  ;;  %v4023_v28 = vmax.f32 %v3682_v53, 0.0  ;;  %v3684_v55 = vpop.f32.mrb[9].mxu0  ;;  %v744_v42 = vld [vmem:[#allocation5 + $0xe38] sm:$0xff]  ;;  %v4498_v44 = vcombine.high %v373_v39, %v381_v16  ;;  %v4497_v49 = vcombine.low %v373_v39, %v381_v16  ;;  %v485_v26 = vld [vmem:[#allocation5 + $0x620] sm:$0xff] }
 0x217   :  { %3987 = vmatpush1.bf16.msra.mxu0 %v4759_v43  ;;  %v4024_v4 = vmax.f32 %v3684_v55, 0.0  ;;  %v3686_v59 = vpop.f32.mrb[10].mxu0  ;;  %v752_v43 = vld [vmem:[#allocation5 + $0xe78] sm:$0xff]  ;;  %v413_v55 = vld [vmem:[#allocation5 + $0x3e0] sm:$0xff] }
 0x218   :  { %3988 = vmatprep.subr.bf16.mxu0 %v4776_v46  ;;  %v5504_v29 = vmax.f32 %v4019_v47, %v4023_v28  ;;  %v3687_v61 = vpop.f32.mrb[11].mxu0  ;;  %v389_v46 = vld [vmem:[#allocation5 + $0x320] sm:$0xff] }
 0x219   :  { %3597 = vmatpush1.bf16.msra.mxu1 %v4909_v48  ;;  %v5506_v3 = vmax.f32 %v4020_v52, %v4024_v4  ;;  %v397_v47 = vld [vmem:[#allocation5 + $0x360] sm:$0xff]  ;;  %v4872_v48 = vcombine.high %v744_v42, %v752_v43  ;;  %v768_v52 = vld [vmem:[#allocation5 + $0xef8] sm:$0xff] }
 0x21a   :  { %3689 = vmatprep.subr.bf16.mxu1 %v4418_v54  ;;  %v4514_v53 = vcombine.high %v389_v46, %v397_v47  ;;  %v4871_v54 = vcombine.low %v744_v42, %v752_v43  ;;  %v405_v28 = vld [vmem:[#allocation5 + $0x3a0] sm:$0xff]  ;;  %v4513_v62 = vcombine.low %v389_v46, %v397_v47  ;;  %v784_v4 = vld [vmem:[#allocation5 + $0xf78] sm:$0xff] }
 0x21b   :  { %3989 = vmatpush1.bf16.msra.mxu0 %v4775_v57  ;;  %v4888_v57 = vcombine.high %v760_v51, %v768_v52  ;;  %v4530_v59 = vcombine.high %v405_v28, %v413_v55  ;;  %v421_v61 = vld [vmem:[#allocation5 + $0x420] sm:$0xff]  ;;  %v4904_v2 = vcombine.high %v776_v63, %v784_v4  ;;  %v4529_v56 = vcombine.low %v405_v28, %v413_v55 }
 0x21c   :  { %4944 = vmatmul.mubr.msk.bf16.vlgmr.msra.gmra.mrb[8].mxu1 %vm5426_vm9, %v5278_v34  ;;  %3990 = vmatprep.subr.bf16.mxu0 %v4792_v60  ;;  %v4887_v60 = vcombine.low %v760_v51, %v768_v52  ;;  %v4903_v6 = vcombine.low %v776_v63, %v784_v4  ;;  %v493_v27 = vld [vmem:[#allocation5 + $0x660] sm:$0xff] }
 0x21d   :  { %3690 = vmatpush1.bf16.msra.mxu1 %v4417_v1  ;;  %4954 = vmatprep.mubr.msk.bf16.mxu1 %vm5380_vm3, %v5278_v34  ;;  %v429_v1 = vld [vmem:[#allocation5 + $0x460] sm:$0xff] }
 0x21e   :  { %3691 = vmatprep.subr.bf16.mxu1 %v4434_v5  ;;  %v792_v5 = vld [vmem:[#allocation5 + $0xfb8] sm:$0xff]  ;;  %v4546_v14 = vcombine.high %v421_v61, %v429_v1  ;;  %v4545_v10 = vcombine.low %v421_v61, %v429_v1  ;;  %v501_v33 = vld [vmem:[#allocation5 + $0x6a0] sm:$0xff] }
 0x21f   :  { %3991 = vmatpush1.bf16.msra.mxu0 %v4791_v12  ;;  %v800_v12 = vld [vmem:[#allocation5 + $0xff8] sm:$0xff]  ;;  %v509_v35 = vld [vmem:[#allocation5 + $0x6e0] sm:$0xff] }
 0x220   :  { %3992 = vmatprep.subr.bf16.mxu0 %v4808_v7  ;;  %v437_v7 = vld [vmem:[#allocation5 + $0x4a0] sm:$0xff]  ;;  %v4920_v9 = vcombine.high %v792_v5, %v800_v12 }
 0x221   :  { %3692 = vmatpush1.bf16.msra.mxu1 %v4433_v8  ;;  %v445_v8 = vld [vmem:[#allocation5 + $0x4e0] sm:$0xff] }
 0x222   :  { %3693 = vmatprep.subr.bf16.mxu1 %v4450_v11  ;;  %v4562_v11 = vcombine.high %v437_v7, %v445_v8  ;;  %v517_v39 = vld [vmem:[#allocation5 + $0x720] sm:$0xff] }
 0x223   :  { %3993 = vmatpush1.bf16.msra.mxu0 %v4807_v13  ;;  %v4919_v13 = vcombine.low %v792_v5, %v800_v12  ;;  %v525_v16 = vld [vmem:[#allocation5 + $0x760] sm:$0xff] }
 0x224   :  { %3994 = vmatprep.subr.bf16.mxu0 %v4824_v19  ;;  %v4561_v19 = vcombine.low %v437_v7, %v445_v8  ;;  %v533_v42 = vld [vmem:[#allocation5 + $0x7a0] sm:$0xff] }
 0x225   :  { %3694 = vmatpush1.bf16.msra.mxu1 %v4449_v20  ;;  %v4578_v20 = vcombine.high %v453_v17, %v461_v18  ;;  %v541_v43 = vld [vmem:[#allocation5 + $0x7e0] sm:$0xff] }
 0x226   :  { %3695 = vmatprep.subr.bf16.mxu1 %v4466_v23  ;;  %v4577_v23 = vcombine.low %v453_v17, %v461_v18  ;;  %v549_v46 = vld [vmem:[#allocation5 + $0x820] sm:$0xff] }
 0x227   :  { %3995 = vmatpush1.bf16.msra.mxu0 %v4823_v25  ;;  %v4594_v25 = vcombine.high %v469_v21, %v477_v22  ;;  %v557_v47 = vld [vmem:[#allocation5 + $0x860] sm:$0xff] }
 0x228   :  { %3996 = vmatprep.subr.bf16.mxu0 %v4840_v30  ;;  %v4593_v30 = vcombine.low %v469_v21, %v477_v22  ;;  %v565_v51 = vld [vmem:[#allocation5 + $0x8a0] sm:$0xff] }
 0x229   :  { %3696 = vmatpush1.bf16.msra.mxu1 %v4465_v31  ;;  %v4610_v31 = vcombine.high %v485_v26, %v493_v27  ;;  %v573_v52 = vld [vmem:[#allocation5 + $0x8e0] sm:$0xff] }
 0x22a   :  { %3697 = vmatprep.subr.bf16.mxu1 %v4482_v37  ;;  %v4609_v37 = vcombine.low %v485_v26, %v493_v27  ;;  %v581_v28 = vld [vmem:[#allocation5 + $0x920] sm:$0xff] }
 0x22b   :  { %3997 = vmatpush1.bf16.msra.mxu0 %v4839_v24  ;;  %v4626_v24 = vcombine.high %v501_v33, %v509_v35  ;;  %v589_v55 = vld [vmem:[#allocation5 + $0x960] sm:$0xff] }
 0x22c   :  { %3998 = vmatprep.subr.bf16.mxu0 %v4856_v40  ;;  %v4625_v40 = vcombine.low %v501_v33, %v509_v35  ;;  %v597_v63 = vld [vmem:[#allocation5 + $0x9a0] sm:$0xff] }
 0x22d   :  { %3698 = vmatpush1.bf16.msra.mxu1 %v4481_v41  ;;  %v4642_v41 = vcombine.high %v517_v39, %v525_v16  ;;  %v605_v4 = vld [vmem:[#allocation5 + $0x9e0] sm:$0xff] }
 0x22e   :  { %3699 = vmatprep.subr.bf16.mxu1 %v4498_v44  ;;  %v4641_v44 = vcombine.low %v517_v39, %v525_v16  ;;  %v613_v61 = vld [vmem:[#allocation5 + $0xa20] sm:$0xff] }
 0x22f   :  { %3999 = vmatpush1.bf16.msra.mxu0 %v4855_v45  ;;  %v4658_v45 = vcombine.high %v533_v42, %v541_v43  ;;  %v621_v1 = vld [vmem:[#allocation5 + $0xa60] sm:$0xff] }
 0x230   :  { %4000 = vmatprep.subr.bf16.mxu0 %v4872_v48  ;;  %v4657_v48 = vcombine.low %v533_v42, %v541_v43  ;;  %v629_v5 = vld [vmem:[#allocation5 + $0xaa0] sm:$0xff] }
 0x231   :  { %3700 = vmatpush1.bf16.msra.mxu1 %v4497_v49  ;;  %v4674_v49 = vcombine.high %v549_v46, %v557_v47  ;;  %v637_v12 = vld [vmem:[#allocation5 + $0xae0] sm:$0xff] }
 0x232   :  { %3701 = vmatprep.subr.bf16.mxu1 %v4514_v53  ;;  %v4673_v53 = vcombine.low %v549_v46, %v557_v47  ;;  %v645_v7 = vld [vmem:[#allocation5 + $0xb20] sm:$0xff] }
 0x233   :  { %4001 = vmatpush1.bf16.msra.mxu0 %v4871_v54  ;;  %v4690_v54 = vcombine.high %v565_v51, %v573_v52  ;;  %v653_v8 = vld [vmem:[#allocation5 + $0xb60] sm:$0xff] }
 0x234   :  { %4002 = vmatprep.subr.bf16.mxu0 %v4888_v57  ;;  %v4689_v57 = vcombine.low %v565_v51, %v573_v52  ;;  %v669_v17 = vld [vmem:[#allocation5 + $0xbe0] sm:$0xff] }
 0x235   :  { %3702 = vmatpush1.bf16.msra.mxu1 %v4513_v62  ;;  %v4706_v62 = vcombine.high %v581_v28, %v589_v55  ;;  %v5136_v42 = vld [vmem:[%s5681_s3 + $0xe0] sm:$0xff]  }
 0x236   :  { %3703 = vmatprep.subr.bf16.mxu1 %v4530_v59  ;;  %v4705_v59 = vcombine.low %v581_v28, %v589_v55  ;;  %v5137_v43 = vld [vmem:[%s5681_s3 + $0xa0] sm:$0xff]   ;;  %v5140_v28 = vld [vmem:[%s5681_s3 + $0xf0] sm:$0xff]  }
 0x237   :  { %4003 = vmatpush1.bf16.msra.mxu0 %v4887_v60  ;;  %v4722_v60 = vcombine.high %v597_v63, %v605_v4  ;;  %v741_v46 = vld [vmem:[#allocation5 + $0xe20] sm:$0xff]  ;;  %v5141_v55 = vld [vmem:[%s5681_s3 + $0xb0] sm:$0xff]  }
 0x238   :  { %4004 = vmatprep.subr.bf16.mxu0 %v4904_v2  ;;  %v4721_v2 = vcombine.low %v597_v63, %v605_v4  ;;  %v749_v47 = vld [vmem:[#allocation5 + $0xe60] sm:$0xff] }
 0x239   :  { %3704 = vmatpush1.bf16.msra.mxu1 %v4529_v56  ;;  %v4738_v56 = vcombine.high %v613_v61, %v621_v1  ;;  %v4866_v52 = vcombine.high %v741_v46, %v749_v47  ;;  %v773_v63 = vld [vmem:[#allocation5 + $0xf20] sm:$0xff] }
 0x23a   :  { %3705 = vmatprep.subr.bf16.mxu1 %v4546_v14  ;;  %v4737_v14 = vcombine.low %v613_v61, %v621_v1  ;;  %v781_v4 = vld [vmem:[#allocation5 + $0xf60] sm:$0xff] }
 0x23b   :  { %4005 = vmatpush1.bf16.msra.mxu0 %v4903_v6  ;;  %v4754_v6 = vcombine.high %v629_v5, %v637_v12  ;;  %v4898_v1 = vcombine.high %v773_v63, %v781_v4 }
 0x23c   :  { %4006 = vmatprep.subr.bf16.mxu0 %v4920_v9  ;;  %v4753_v9 = vcombine.low %v629_v5, %v637_v12  ;;  %v5144_v5 = vld [vmem:[%s5681_s3 + $0x100] sm:$0xff]  }
 0x23d   :  { %3706 = vmatpush1.bf16.msra.mxu1 %v4545_v10  ;;  %v4770_v10 = vcombine.high %v645_v7, %v653_v8  ;;  %v5145_v12 = vld [vmem:[%s5681_s3 + $0xc0] sm:$0xff]  }
 0x23e   :  { %3707 = vmatprep.subr.bf16.mxu1 %v4562_v11 }
 0x23f   :  { %4007 = vmatpush1.bf16.msra.mxu0 %v4919_v13  ;;  %v661_v13 = vld [vmem:[#allocation5 + $0xba0] sm:$0xff] }
 0x240   :  { %v4786_v22 = vcombine.high %v661_v13, %v669_v17  ;;  %v4785_v26 = vcombine.low %v661_v13, %v669_v17  ;;  %5046 = vmatprep.subr.bf16.mxu0 %v5136_v42 }
 0x241   :  { %3708 = vmatpush1.bf16.msra.mxu1 %v4561_v19 }
 0x242   :  { %4984 = vmatmul.mubr.msk.bf16.vlgmr.msra.gmra.mrb[16].mxu0 %vm5426_vm9, %v5278_v34  ;;  %3709 = vmatprep.subr.bf16.mxu1 %v4578_v20  ;;  %v4769_v20 = vcombine.low %v645_v7, %v653_v8  ;;  %v295_v7 = vld [vmem:[#allocation5 + $0x30] sm:$0xff] }
 0x243   :  { %5047 = vmatpush3.bf16.msra.mxu0 %v5137_v43  ;;  %v303_v8 = vld [vmem:[#allocation5 + $0x70] sm:$0xff] }
 0x245   :  { %3710 = vmatpush1.bf16.msra.mxu1 %v4577_v23  ;;  %v677_v23 = vld [vmem:[#allocation5 + $0xc20] sm:$0xff] }
 0x246   :  { %3711 = vmatprep.subr.bf16.mxu1 %v4594_v25  ;;  %v685_v25 = vld [vmem:[#allocation5 + $0xc60] sm:$0xff] }
 0x247   :  { %v4802_v27 = vcombine.high %v677_v23, %v685_v25  ;;  %v4801_v33 = vcombine.low %v677_v23, %v685_v25  ;;  %v5148_v25 = vld [vmem:[%s5681_s3 + $0x110] sm:$0xff]  }
 0x249   :  { %3712 = vmatpush1.bf16.msra.mxu1 %v4593_v30  ;;  %v693_v30 = vld [vmem:[#allocation5 + $0xca0] sm:$0xff] }
 0x24a   :  { %3713 = vmatprep.subr.bf16.mxu1 %v4610_v31  ;;  %v701_v31 = vld [vmem:[#allocation5 + $0xce0] sm:$0xff] }
 0x24b   :  { %v4818_v35 = vcombine.high %v693_v30, %v701_v31  ;;  %v4817_v39 = vcombine.low %v693_v30, %v701_v31  ;;  %v4421_v30 = vcombine.low %v295_v7, %v303_v8 }
 0x24d   :  { %3714 = vmatpush1.bf16.msra.mxu1 %v4609_v37  ;;  %v709_v37 = vld [vmem:[#allocation5 + $0xd20] sm:$0xff] }
 0x24e   :  { %3715 = vmatprep.subr.bf16.mxu1 %v4626_v24  ;;  %v717_v24 = vld [vmem:[#allocation5 + $0xd60] sm:$0xff] }
 0x24f   :  { %v4834_v16 = vcombine.high %v709_v37, %v717_v24 }
 0x251   :  { %3716 = vmatpush1.bf16.msra.mxu1 %v4625_v40  ;;  %v725_v40 = vld [vmem:[#allocation5 + $0xda0] sm:$0xff] }
 0x252   :  { %3717 = vmatprep.subr.bf16.mxu1 %v4642_v41  ;;  %v733_v41 = vld [vmem:[#allocation5 + $0xde0] sm:$0xff] }
 0x253   :  { %v4849_v51 = vcombine.low %v725_v40, %v733_v41 }
 0x255   :  { %3718 = vmatpush1.bf16.msra.mxu1 %v4641_v44  ;;  %v4833_v44 = vcombine.low %v709_v37, %v717_v24  ;;  %v5150_v37 = vld [vmem:[%s5681_s3 + $0x118] sm:$0xff]  }
 0x256   :  { %3719 = vmatprep.subr.bf16.mxu1 %v4658_v45  ;;  %v4850_v45 = vcombine.high %v725_v40, %v733_v41  ;;  %v5151_v24 = vld [vmem:[%s5681_s3 + $0xd8] sm:$0xff]  }
 0x257   :  { %v343_v40 = vld [vmem:[#allocation5 + $0x1b0] sm:$0xff] }
 0x258   :  { %v351_v41 = vld [vmem:[#allocation5 + $0x1f0] sm:$0xff] }
 0x259   :  { %3720 = vmatpush1.bf16.msra.mxu1 %v4657_v48  ;;  %v5138_v48 = vld [vmem:[%s5681_s3 + $0xe8] sm:$0xff]   ;;  %v4470_v43 = vcombine.high %v343_v40, %v351_v41 }
 0x25a   :  { %3730 = vmatprep.subr.bf16.mxu1 %v4674_v49  ;;  %v5139_v49 = vld [vmem:[%s5681_s3 + $0xa8] sm:$0xff]   ;;  %5048 = vmatprep.subr.bf16.mxu0 %v5138_v48  ;;  %v375_v48 = vld [vmem:[#allocation5 + $0x2b0] sm:$0xff] }
 0x25b   :  { %5049 = vmatpush3.bf16.msra.mxu0 %v5139_v49  ;;  %v383_v49 = vld [vmem:[#allocation5 + $0x2f0] sm:$0xff] }
 0x25c   :  { %4956 = vmatmul.mubr.msk.bf16.vlgmr.msra.gmra.mrb[12].mxu1 %vm5397_vm7, %v5278_v34  ;;  %5050 = vmatprep.subr.bf16.mxu0 %v5140_v28 }
 0x25d   :  { %3731 = vmatpush1.bf16.msra.mxu1 %v4673_v53  ;;  %4958 = vmatprep.mubr.msk.bf16.mxu1 %vm5401_vm8, %v5278_v34  ;;  %v757_v53 = vld [vmem:[#allocation5 + $0xea0] sm:$0xff] }
 0x25e   :  { %3732 = vmatprep.subr.bf16.mxu1 %v4690_v54  ;;  %v765_v54 = vld [vmem:[#allocation5 + $0xee0] sm:$0xff] }
 0x25f   :  { %5051 = vmatpush3.bf16.msra.mxu0 %v5141_v55  ;;  %v4881_v61 = vcombine.low %v757_v53, %v765_v54  ;;  %v407_v55 = vld [vmem:[#allocation5 + $0x3b0] sm:$0xff] }
 0x261   :  { %3733 = vmatpush1.bf16.msra.mxu1 %v4689_v57  ;;  %v4865_v57 = vcombine.low %v741_v46, %v749_v47  ;;  %v4469_v46 = vcombine.low %v343_v40, %v351_v41  ;;  %v551_v41 = vld [vmem:[#allocation5 + $0x830] sm:$0xff] }
 0x262   :  { %3734 = vmatprep.subr.bf16.mxu1 %v4706_v62  ;;  %v4882_v62 = vcombine.high %v757_v53, %v765_v54  ;;  %v399_v53 = vld [vmem:[#allocation5 + $0x370] sm:$0xff]  ;;  %v4501_v54 = vcombine.low %v375_v48, %v383_v49 }
 0x265   :  { %3735 = vmatpush1.bf16.msra.mxu1 %v4705_v59  ;;  %v5142_v59 = vld [vmem:[%s5681_s3 + $0xf8] sm:$0xff]  }
 0x266   :  { %3736 = vmatprep.subr.bf16.mxu1 %v4722_v60  ;;  %v5143_v60 = vld [vmem:[%s5681_s3 + $0xb8] sm:$0xff]   ;;  %5052 = vmatprep.subr.bf16.mxu0 %v5142_v59 }
 0x267   :  { %5053 = vmatpush3.bf16.msra.mxu0 %v5143_v60  ;;  %v431_v59 = vld [vmem:[#allocation5 + $0x470] sm:$0xff] }
 0x268   :  { %5054 = vmatprep.subr.bf16.mxu0 %v5144_v5 }
 0x269   :  { %3737 = vmatpush1.bf16.msra.mxu1 %v4721_v2  ;;  %v789_v2 = vld [vmem:[#allocation5 + $0xfa0] sm:$0xff] }
 0x26a   :  { %3738 = vmatprep.subr.bf16.mxu1 %v4738_v56  ;;  %v797_v56 = vld [vmem:[#allocation5 + $0xfe0] sm:$0xff] }
 0x26b   :  { %5055 = vmatpush3.bf16.msra.mxu0 %v5145_v12  ;;  %v4913_v13 = vcombine.low %v789_v2, %v797_v56  ;;  %v455_v12 = vld [vmem:[#allocation5 + $0x530] sm:$0xff] }
 0x26d   :  { %3739 = vmatpush1.bf16.msra.mxu1 %v4737_v14  ;;  %v4897_v14 = vcombine.low %v773_v63, %v781_v4  ;;  %v423_v4 = vld [vmem:[#allocation5 + $0x430] sm:$0xff] }
 0x26e   :  { %3740 = vmatprep.subr.bf16.mxu1 %v4754_v6  ;;  %v4914_v6 = vcombine.high %v789_v2, %v797_v56  ;;  %v447_v2 = vld [vmem:[#allocation5 + $0x4f0] sm:$0xff]  ;;  %v4549_v56 = vcombine.low %v423_v4, %v431_v59 }
 0x26f   :  { %v5523_v11 = vpop.f32.mrb[4].mxu1 }
 0x270   :  { %v5525_v18 = vpop.f32.mrb[5].mxu1 }
 0x271   :  { %v3440_v19 = vpop.f32.mrb[6].mxu1  ;;  %3741 = vmatpush1.bf16.msra.mxu1 %v4753_v9  ;;  %v5146_v9 = vld [vmem:[%s5681_s3 + $0x108] sm:$0xff]  }
 0x272   :  { %v3441_v21 = vpop.f32.mrb[7].mxu1  ;;  %3742 = vmatprep.subr.bf16.mxu1 %v4770_v10  ;;  %v5147_v10 = vld [vmem:[%s5681_s3 + $0xc8] sm:$0xff]   ;;  %5056 = vmatprep.subr.bf16.mxu0 %v5146_v9  ;;  %v4422_v19 = vcombine.high %v295_v7, %v303_v8  ;;  %v471_v8 = vld [vmem:[#allocation5 + $0x5b0] sm:$0xff] }
 0x273   :  { %5057 = vmatpush3.bf16.msra.mxu0 %v5147_v10  ;;  %v311_v21 = vld [vmem:[#allocation5 + $0xb0] sm:$0xff] }
 0x274   :  { %5058 = vmatprep.subr.bf16.mxu0 %v5148_v25  ;;  %v479_v9 = vld [vmem:[#allocation5 + $0x5f0] sm:$0xff] }
 0x275   :  { %3743 = vmatpush1.bf16.msra.mxu1 %v4769_v20  ;;  %v503_v25 = vld [vmem:[#allocation5 + $0x6b0] sm:$0xff] }
 0x276   :  { %3744 = vmatprep.subr.bf16.mxu1 %v4786_v22  ;;  %v319_v22 = vld [vmem:[#allocation5 + $0xf0] sm:$0xff] }
 0x277   :  { %v4438_v31 = vcombine.high %v311_v21, %v319_v22 }
 0x279   :  { %3745 = vmatpush1.bf16.msra.mxu1 %v4785_v26 }
 0x27a   :  { %3746 = vmatprep.subr.bf16.mxu1 %v4802_v27  ;;  %v5149_v27 = vld [vmem:[%s5681_s3 + $0xd0] sm:$0xff]  }
 0x27b   :  { %5059 = vmatpush3.bf16.msra.mxu0 %v5149_v27 }
 0x27c   :  { %5060 = vmatprep.subr.bf16.mxu0 %v5150_v37 }
 0x27d   :  { %3747 = vmatpush1.bf16.msra.mxu1 %v4801_v33  ;;  %v327_v33 = vld [vmem:[#allocation5 + $0x130] sm:$0xff] }
 0x27e   :  { %3748 = vmatprep.subr.bf16.mxu1 %v4818_v35  ;;  %v335_v35 = vld [vmem:[#allocation5 + $0x170] sm:$0xff] }
 0x27f   :  { %5061 = vmatpush3.bf16.msra.mxu0 %v5151_v24  ;;  %v4453_v42 = vcombine.low %v327_v33, %v335_v35  ;;  %v535_v24 = vld [vmem:[#allocation5 + $0x7b0] sm:$0xff] }
 0x281   :  { %3749 = vmatpush1.bf16.msra.mxu1 %v4817_v39  ;;  %v4437_v39 = vcombine.low %v311_v21, %v319_v22  ;;  %v495_v21 = vld [vmem:[#allocation5 + $0x670] sm:$0xff]  ;;  %v4597_v22 = vcombine.low %v471_v8, %v479_v9 }
 0x282   :  { %3750 = vmatprep.subr.bf16.mxu1 %v4834_v16  ;;  %v4454_v16 = vcombine.high %v327_v33, %v335_v35  ;;  %v527_v33 = vld [vmem:[#allocation5 + $0x770] sm:$0xff] }
 0x285   :  { %3751 = vmatpush1.bf16.msra.mxu1 %v4833_v44  ;;  %v359_v44 = vld [vmem:[#allocation5 + $0x230] sm:$0xff] }
 0x286   :  { %3752 = vmatprep.subr.bf16.mxu1 %v4850_v45  ;;  %v367_v45 = vld [vmem:[#allocation5 + $0x270] sm:$0xff] }
 0x287   :  { %v4486_v47 = vcombine.high %v359_v44, %v367_v45  ;;  %v4485_v32 = vcombine.low %v359_v44, %v367_v45  ;;  %v567_v45 = vld [vmem:[#allocation5 + $0x8b0] sm:$0xff] }
 0x289   :  { %3753 = vmatpush1.bf16.msra.mxu1 %v4849_v51  ;;  %v4502_v51 = vcombine.high %v375_v48, %v383_v49  ;;  %v583_v49 = vld [vmem:[#allocation5 + $0x930] sm:$0xff] }
 0x28a   :  { %3754 = vmatprep.subr.bf16.mxu1 %v4866_v52  ;;  %v391_v52 = vld [vmem:[#allocation5 + $0x330] sm:$0xff] }
 0x28b   :  { %v4518_v28 = vcombine.high %v391_v52, %v399_v53 }
 0x28d   :  { %3755 = vmatpush1.bf16.msra.mxu1 %v4865_v57  ;;  %v415_v57 = vld [vmem:[#allocation5 + $0x3f0] sm:$0xff] }
 0x28e   :  { %3756 = vmatprep.subr.bf16.mxu1 %v4882_v62  ;;  %v4517_v62 = vcombine.low %v391_v52, %v399_v53  ;;  %v4534_v63 = vcombine.high %v407_v55, %v415_v57  ;;  %v4533_v60 = vcombine.low %v407_v55, %v415_v57  ;;  %v599_v53 = vld [vmem:[#allocation5 + $0x9b0] sm:$0xff] }
 0x28f   :  { %v615_v57 = vld [vmem:[#allocation5 + $0xa30] sm:$0xff] }
 0x291   :  { %3757 = vmatpush1.bf16.msra.mxu1 %v4881_v61  ;;  %v4550_v61 = vcombine.high %v423_v4, %v431_v59  ;;  %v631_v4 = vld [vmem:[#allocation5 + $0xab0] sm:$0xff] }
 0x292   :  { %3758 = vmatprep.subr.bf16.mxu1 %v4898_v1  ;;  %v439_v1 = vld [vmem:[#allocation5 + $0x4b0] sm:$0xff] }
 0x293   :  { %v4566_v5 = vcombine.high %v439_v1, %v447_v2  ;;  %v639_v59 = vld [vmem:[#allocation5 + $0xaf0] sm:$0xff] }
 0x294   :  { %v4758_v38 = vcombine.high %v631_v4, %v639_v59 }
 0x295   :  { %3759 = vmatpush1.bf16.msra.mxu1 %v4897_v14  ;;  %v5563_v17 = vpop.f32.mrb[12].mxu0  ;;  %v463_v14 = vld [vmem:[#allocation5 + $0x570] sm:$0xff] }
 0x296   :  { %3760 = vmatprep.subr.bf16.mxu1 %v4914_v6  ;;  %v5565_v20 = vpop.f32.mrb[13].mxu0  ;;  %v4565_v6 = vcombine.low %v439_v1, %v447_v2  ;;  %v4582_v7 = vcombine.high %v455_v12, %v463_v14  ;;  %v4581_v10 = vcombine.low %v455_v12, %v463_v14  ;;  %v655_v1 = vld [vmem:[#allocation5 + $0xb70] sm:$0xff]  ;;  %v4757_v2 = vcombine.low %v631_v4, %v639_v59 }
 0x297   :  { %v3850_v23 = vpop.f32.mrb[14].mxu0  ;;  %v663_v12 = vld [vmem:[#allocation5 + $0xbb0] sm:$0xff]  ;;  %v4028_v4 = vmax.f32 %v5565_v20, 0.0 }
 0x298   :  { %v3851_v26 = vpop.f32.mrb[15].mxu0  ;;  %v671_v14 = vld [vmem:[#allocation5 + $0xbf0] sm:$0xff] }
 0x299   :  { %3761 = vmatpush1.bf16.msra.mxu1 %v4913_v13  ;;  %v4598_v13 = vcombine.high %v471_v8, %v479_v9  ;;  %v511_v26 = vld [vmem:[#allocation5 + $0x6f0] sm:$0xff]  ;;  %v4018_v9 = vmax.f32 %v5525_v18, 0.0 }
 0x29a   :  { %3853 = vmatprep.subr.bf16.mxu1 %v4422_v19  ;;  %v487_v19 = vld [vmem:[#allocation5 + $0x630] sm:$0xff]  ;;  %v4629_v35 = vcombine.low %v503_v25, %v511_v26 }
 0x29b   :  { %v4614_v23 = vcombine.high %v487_v19, %v495_v21  ;;  %v4613_v27 = vcombine.low %v487_v19, %v495_v21 }
 0x29c   :  { %4960 = vmatmul.mubr.msk.bf16.vlgmr.msra.gmra.mrb[12].mxu1 %vm5426_vm9, %v5278_v34 }
 0x29d   :  { %3854 = vmatpush1.bf16.msra.mxu1 %v4421_v30  ;;  %4970 = vmatprep.mubr.msk.bf16.mxu1 %vm5380_vm3, %v5278_v34  ;;  %v4630_v30 = vcombine.high %v503_v25, %v511_v26  ;;  %v679_v26 = vld [vmem:[#allocation5 + $0xc30] sm:$0xff] }
 0x29e   :  { %3855 = vmatprep.subr.bf16.mxu1 %v4438_v31  ;;  %v519_v31 = vld [vmem:[#allocation5 + $0x730] sm:$0xff] }
 0x29f   :  { %v4646_v37 = vcombine.high %v519_v31, %v527_v33 }
 0x2a1   :  { %3856 = vmatpush1.bf16.msra.mxu1 %v4437_v39  ;;  %v543_v39 = vld [vmem:[#allocation5 + $0x7f0] sm:$0xff] }
 0x2a2   :  { %3857 = vmatprep.subr.bf16.mxu1 %v4454_v16  ;;  %v4645_v16 = vcombine.low %v519_v31, %v527_v33  ;;  %v4662_v40 = vcombine.high %v535_v24, %v543_v39  ;;  %v695_v31 = vld [vmem:[#allocation5 + $0xcb0] sm:$0xff] }
 0x2a3   :  { %v703_v33 = vld [vmem:[#allocation5 + $0xcf0] sm:$0xff] }
 0x2a5   :  { %3858 = vmatpush1.bf16.msra.mxu1 %v4453_v42  ;;  %v559_v42 = vld [vmem:[#allocation5 + $0x870] sm:$0xff] }
 0x2a6   :  { %3859 = vmatprep.subr.bf16.mxu1 %v4470_v43  ;;  %v4661_v43 = vcombine.low %v535_v24, %v543_v39  ;;  %v4678_v44 = vcombine.high %v551_v41, %v559_v42  ;;  %v719_v24 = vld [vmem:[#allocation5 + $0xd70] sm:$0xff]  ;;  %v4821_v39 = vcombine.low %v695_v31, %v703_v33 }
 0x2a9   :  { %3860 = vmatpush1.bf16.msra.mxu1 %v4469_v46  ;;  %v575_v46 = vld [vmem:[#allocation5 + $0x8f0] sm:$0xff] }
 0x2aa   :  { %3861 = vmatprep.subr.bf16.mxu1 %v4486_v47  ;;  %v4677_v47 = vcombine.low %v551_v41, %v559_v42  ;;  %v4694_v48 = vcombine.high %v567_v45, %v575_v46  ;;  %v735_v41 = vld [vmem:[#allocation5 + $0xdf0] sm:$0xff] }
 0x2ad   :  { %3862 = vmatpush1.bf16.msra.mxu1 %v4485_v32  ;;  %v591_v32 = vld [vmem:[#allocation5 + $0x970] sm:$0xff] }
 0x2ae   :  { %3863 = vmatprep.subr.bf16.mxu1 %v4502_v51  ;;  %v4693_v51 = vcombine.low %v567_v45, %v575_v46  ;;  %v4710_v52 = vcombine.high %v583_v49, %v591_v32  ;;  %v751_v45 = vld [vmem:[#allocation5 + $0xe70] sm:$0xff] }
 0x2b1   :  { %3864 = vmatpush1.bf16.msra.mxu1 %v4501_v54  ;;  %v607_v54 = vld [vmem:[#allocation5 + $0x9f0] sm:$0xff] }
 0x2b2   :  { %3865 = vmatprep.subr.bf16.mxu1 %v4518_v28  ;;  %v4709_v28 = vcombine.low %v583_v49, %v591_v32  ;;  %v4726_v55 = vcombine.high %v599_v53, %v607_v54  ;;  %v767_v49 = vld [vmem:[#allocation5 + $0xef0] sm:$0xff] }
 0x2b5   :  { %3866 = vmatpush1.bf16.msra.mxu1 %v4517_v62  ;;  %v623_v62 = vld [vmem:[#allocation5 + $0xa70] sm:$0xff] }
 0x2b6   :  { %3867 = vmatprep.subr.bf16.mxu1 %v4534_v63  ;;  %v4725_v63 = vcombine.low %v599_v53, %v607_v54  ;;  %v4742_v36 = vcombine.high %v615_v57, %v623_v62  ;;  %v783_v53 = vld [vmem:[#allocation5 + $0xf70] sm:$0xff] }
 0x2b9   :  { %3868 = vmatpush1.bf16.msra.mxu1 %v4533_v60  ;;  %v4741_v60 = vcombine.low %v615_v57, %v623_v62  ;;  %v799_v57 = vld [vmem:[#allocation5 + $0xff0] sm:$0xff] }
 0x2ba   :  { %3869 = vmatprep.subr.bf16.mxu1 %v4550_v61  ;;  %v647_v61 = vld [vmem:[#allocation5 + $0xb30] sm:$0xff] }
 0x2bb   :  { %v4773_v19 = vcombine.low %v647_v61, %v655_v1 }
 0x2bd   :  { %3870 = vmatpush1.bf16.msra.mxu1 %v4549_v56  ;;  %v4774_v56 = vcombine.high %v647_v61, %v655_v1  ;;  %v5152_v1 = vld [vmem:[%s5681_s3 + $0x60] sm:$0xff]  }
 0x2be   :  { %3871 = vmatprep.subr.bf16.mxu1 %v4566_v5 }
 0x2c1   :  { %3872 = vmatpush1.bf16.msra.mxu1 %v4565_v6  ;;  %v4017_v6 = vmax.f32 %v5523_v11, 0.0 }
 0x2c2   :  { %3873 = vmatprep.subr.bf16.mxu1 %v4582_v7 }
 0x2c5   :  { %3874 = vmatpush1.bf16.msra.mxu1 %v4581_v10 }
 0x2c6   :  { %3875 = vmatprep.subr.bf16.mxu1 %v4598_v13 }
 0x2c9   :  { %3876 = vmatpush1.bf16.msra.mxu1 %v4597_v22 }
 0x2ca   :  { %3877 = vmatprep.subr.bf16.mxu1 %v4614_v23  ;;  %v4790_v23 = vcombine.high %v663_v12, %v671_v14 }
 0x2cd   :  { %3878 = vmatpush1.bf16.msra.mxu1 %v4613_v27  ;;  %v687_v27 = vld [vmem:[#allocation5 + $0xc70] sm:$0xff] }
 0x2ce   :  { %3879 = vmatprep.subr.bf16.mxu1 %v4630_v30  ;;  %v4789_v30 = vcombine.low %v663_v12, %v671_v14  ;;  %v4806_v11 = vcombine.high %v679_v26, %v687_v27  ;;  %v4805_v18 = vcombine.low %v679_v26, %v687_v27 }
 0x2d1   :  { %3880 = vmatpush1.bf16.msra.mxu1 %v4629_v35  ;;  %v4822_v35 = vcombine.high %v695_v31, %v703_v33  ;;  %v5165_v31 = vld [vmem:[%s5681_s3 + $0x50] sm:$0xff]  }
 0x2d2   :  { %3881 = vmatprep.subr.bf16.mxu1 %v4646_v37  ;;  %v711_v37 = vld [vmem:[#allocation5 + $0xd30] sm:$0xff] }
 0x2d3   :  { %v4837_v42 = vcombine.low %v711_v37, %v719_v24 }
 0x2d5   :  { %3882 = vmatpush1.bf16.msra.mxu1 %v4645_v16  ;;  %v4838_v16 = vcombine.high %v711_v37, %v719_v24  ;;  %v204_v37 = vpop.permute.xlu0 %203 }
 0x2d6   :  { %3883 = vmatprep.subr.bf16.mxu1 %v4662_v40  ;;  %v727_v40 = vld [vmem:[#allocation5 + $0xdb0] sm:$0xff]  ;;  %v245_v24 = vadd.f32 %v5494_v15, %v204_v37 }
 0x2d7   :  { %v4853_v46 = vcombine.low %v727_v40, %v735_v41 }
 0x2d9   :  { %3884 = vmatpush1.bf16.msra.mxu1 %v4661_v43  ;;  %v4854_v43 = vcombine.high %v727_v40, %v735_v41 }
 0x2da   :  { %3894 = vmatprep.subr.bf16.mxu1 %v4678_v44  ;;  %v743_v44 = vld [vmem:[#allocation5 + $0xe30] sm:$0xff] }
 0x2db   :  { %v4869_v32 = vcombine.low %v743_v44, %v751_v45 }
 0x2dc   :  { %4972 = vmatmul.mubr.msk.bf16.vlgmr.msra.gmra.mrb[16].mxu1 %vm5397_vm7, %v5278_v34 }
 0x2dd   :  { %3895 = vmatpush1.bf16.msra.mxu1 %v4677_v47  ;;  %4974 = vmatprep.mubr.msk.bf16.mxu1 %vm5401_vm8, %v5278_v34  ;;  %v4870_v47 = vcombine.high %v743_v44, %v751_v45 }
 0x2de   :  { %3896 = vmatprep.subr.bf16.mxu1 %v4694_v48  ;;  %v759_v48 = vld [vmem:[#allocation5 + $0xeb0] sm:$0xff] }
 0x2df   :  { %v4885_v54 = vcombine.low %v759_v48, %v767_v49 }
 0x2e1   :  { %3897 = vmatpush1.bf16.msra.mxu1 %v4693_v51  ;;  %v4886_v51 = vcombine.high %v759_v48, %v767_v49 }
 0x2e2   :  { %3898 = vmatprep.subr.bf16.mxu1 %v4710_v52  ;;  %v775_v52 = vld [vmem:[#allocation5 + $0xf30] sm:$0xff] }
 0x2e3   :  { %v4901_v62 = vcombine.low %v775_v52, %v783_v53 }
 0x2e5   :  { %3899 = vmatpush1.bf16.msra.mxu1 %v4709_v28  ;;  %v4902_v28 = vcombine.high %v775_v52, %v783_v53 }
 0x2e6   :  { %3900 = vmatprep.subr.bf16.mxu1 %v4726_v55  ;;  %v791_v55 = vld [vmem:[#allocation5 + $0xfb0] sm:$0xff] }
 0x2e9   :  { %3901 = vmatpush1.bf16.msra.mxu1 %v4725_v63  ;;  %v4918_v63 = vcombine.high %v791_v55, %v799_v57 }
 0x2ea   :  { %3902 = vmatprep.subr.bf16.mxu1 %v4742_v36  ;;  %v4027_v36 = vmax.f32 %v5563_v17, 0.0  ;;  %v5153_v17 = vld [vmem:[%s5681_s3 + $0x20] sm:$0xff]  }
 0x2ed   :  { %3903 = vmatpush1.bf16.msra.mxu1 %v4741_v60  ;;  %v4917_v60 = vcombine.low %v791_v55, %v799_v57 }
 0x2ee   :  { %3904 = vmatprep.subr.bf16.mxu1 %v4758_v38 }
 0x2ef   :  { %v3600_v5 = vpop.f32.mrb[8].mxu1 }
 0x2f0   :  { %v4021_v7 = vmax.f32 %v3600_v5, 0.0  ;;  %v3602_v8 = vpop.f32.mrb[9].mxu1 }
 0x2f1   :  { %v4022_v10 = vmax.f32 %v3602_v8, 0.0  ;;  %v3604_v13 = vpop.f32.mrb[10].mxu1  ;;  %3905 = vmatpush1.bf16.msra.mxu1 %v4757_v2 }
 0x2f2   :  { %v5593_v21 = vmax.f32 %v4017_v6, %v4021_v7  ;;  %v3605_v22 = vpop.f32.mrb[11].mxu1  ;;  %3906 = vmatprep.subr.bf16.mxu1 %v4774_v56  ;;  %v5154_v6 = vld [vmem:[%s5681_s3 + $0x68] sm:$0xff]   ;;  %v5160_v13 = vld [vmem:[%s5681_s3 + $0x80] sm:$0xff]  }
 0x2f3   :  { %v5595_v25 = vmax.f32 %v4018_v9, %v4022_v10  ;;  %v5155_v9 = vld [vmem:[%s5681_s3 + $0x28] sm:$0xff]  }
 0x2f4   :  { %v5162_v22 = vld [vmem:[%s5681_s3 + $0x88] sm:$0xff]  }
 0x2f5   :  { %3907 = vmatpush1.bf16.msra.mxu1 %v4773_v19  ;;  %v5161_v19 = vld [vmem:[%s5681_s3 + $0x40] sm:$0xff]  }
 0x2f6   :  { %3908 = vmatprep.subr.bf16.mxu1 %v4790_v23  ;;  %v5163_v23 = vld [vmem:[%s5681_s3 + $0x48] sm:$0xff]  }
 0x2f9   :  { %3909 = vmatpush1.bf16.msra.mxu1 %v4789_v30  ;;  %v5164_v30 = vld [vmem:[%s5681_s3 + $0x90] sm:$0xff]  }
 0x2fa   :  { %3910 = vmatprep.subr.bf16.mxu1 %v4806_v11 }
 0x2fd   :  { %3911 = vmatpush1.bf16.msra.mxu1 %v4805_v18  ;;  %v5166_v18 = vld [vmem:[%s5681_s3 + $0x98] sm:$0xff]  }
 0x2fe   :  { %3912 = vmatprep.subr.bf16.mxu1 %v4822_v35  ;;  %v5167_v35 = vld [vmem:[%s5681_s3 + $0x58] sm:$0xff]  }
 0x301   :  { %3913 = vmatpush1.bf16.msra.mxu1 %v4821_v39  ;;  %v250_v39 = vsub.f32 0.0, %v245_v24 }
 0x302   :  { %3914 = vmatprep.subr.bf16.mxu1 %v4838_v16 }
 0x303   :  { %v251_v16 = vmul.f32 1.442695, %v250_v39 }
 0x305   :  { %3915 = vmatpush1.bf16.msra.mxu1 %v4837_v42  ;;  %5169 = vpow2.f32 %v251_v16 }
 0x306   :  { %3916 = vmatprep.subr.bf16.mxu1 %v4854_v43 }
 0x309   :  { %3917 = vmatpush1.bf16.msra.mxu1 %v4853_v46 }
 0x30a   :  { %3918 = vmatprep.subr.bf16.mxu1 %v4870_v47 }
 0x30d   :  { %3919 = vmatpush1.bf16.msra.mxu1 %v4869_v32 }
 0x30e   :  { %3920 = vmatprep.subr.bf16.mxu1 %v4886_v51 }
 0x30f   :  { %v5170_v40 = vpop.eup %5169 }
 0x310   :  { %v253_v41 = vadd.f32 1.0, %v5170_v40 }
 0x311   :  { %3921 = vmatpush1.bf16.msra.mxu1 %v4885_v54 }
 0x312   :  { %3922 = vmatprep.subr.bf16.mxu1 %v4902_v28  ;;  %5171 = vrcp.f32 %v253_v41 }
 0x315   :  { %3923 = vmatpush1.bf16.msra.mxu1 %v4901_v62  ;;  %v4010_v59 = vpop.f32.mrb[16].mxu0  ;;  %v5168_v62 = vld [vmem:[%s5681_s3 + $0x18] sm:$0xff]  }
 0x316   :  { %v4031_v38 = vmax.f32 %v4010_v59, 0.0  ;;  %v4012_v61 = vpop.f32.mrb[17].mxu0  ;;  %3924 = vmatprep.subr.bf16.mxu1 %v4918_v63 }
 0x317   :  { %v4032_v2 = vmax.f32 %v4012_v61, 0.0  ;;  %v4014_v56 = vpop.f32.mrb[18].mxu0 }
 0x318   :  { %v4039_v5 = vmax.f32 %v4027_v36, %v4031_v38  ;;  %v4015_v12 = vpop.f32.mrb[19].mxu0 }
 0x319   :  { %v4040_v14 = vmax.f32 %v4028_v4, %v4032_v2  ;;  %3925 = vmatpush1.bf16.msra.mxu1 %v4917_v60  ;;  %v4372_v2 = vpop.permute.xlu0 %4371 }
 0x31a   :  { %v4043_v20 = vmax.f32 %v5504_v29, %v4039_v5  ;;  %5024 = vmatprep.subr.bf16.mxu1 %v5152_v1  ;;  %v5156_v29 = vld [vmem:[%s5681_s3 + $0x70] sm:$0xff]  }
 0x31b   :  { %v4044_v7 = vmax.f32 %v5506_v3, %v4040_v14  ;;  %v5159_v3 = vld [vmem:[%s5681_s3 + $0x38] sm:$0xff]  }
 0x31c   :  { %4976 = vmatmul.mubr.msk.bf16.vlgmr.msra.gmra.mrb[16].mxu1 %vm5426_vm9, %v5278_v34  ;;  %v4048_v10 = vpack.c.bf16 %v4043_v20, %v4043_v20  ;;  %v5158_v34 = vld [vmem:[%s5681_s3 + $0x78] sm:$0xff]   ;;  %v5172_v36 = vpop.eup %5171  ;;  %s5281_s3 = smov [#allocation8]  }
 0x31d   :  { %v4049_v8 = vpack.c.bf16 %v4044_v7, %v4044_v7  ;;  %5025 = vmatpush3.bf16.msra.mxu1 %v5153_v17  ;;  %s4394_s21 = sshll.u32 %s5281_s3, 4  ;;  %s4395_s21 = int_to_ptr.vmem [resolvable:$true] %s4394_s21 }
 0x31e   :  { %5026 = vmatprep.subr.bf16.mxu1 %v5154_v6  ;;  %s5243_s22 = scalar_lea.vmem %s4395_s21, 16  ;;  %s5247_s23 = scalar_lea.vmem %s4395_s21, 32 }
 0x31f   :  { %4314 = vmatprep.mubr.bf16.mxu0 %v4049_v8  ;;  %p5244_p10 = scmp.ne.s32.totalorder %s4395_s21, %s5243_s22  ;;  %p5248_p11 = scmp.lt.s32.totalorder %s4395_s21, %s4395_s21 }
 0x320   :  { %4315 = vmatmul.mubr.bf16.vlgmr.msra.gmra.mrb[20].mxu0 %v4048_v10  ;;  %p5249_p12 = scmp.lt.s32.totalorder %s5247_s23, %s5243_s22 }
 0x321   :  { %5027 = vmatpush3.bf16.msra.mxu1 %v5155_v9 }
 0x322   :  { %5028 = vmatprep.subr.bf16.mxu1 %v5156_v29  ;;  %p5250_p13 = por %p5249_p12, %p5248_p11 }
 0x324   :  { %p5251_p0 = pnand %p5250_p13, %p5244_p10 }
 0x325   :  { %5029 = vmatpush3.bf16.msra.mxu1 %v5157_v50 }
 0x326   :  { %5030 = vmatprep.subr.bf16.mxu1 %v5158_v34 }
 0x329   :  { %5031 = vmatpush3.bf16.msra.mxu1 %v5159_v3 }
 0x32a   :  { %5032 = vmatprep.subr.bf16.mxu1 %v5160_v13 }
 0x32d   :  { %5033 = vmatpush3.bf16.msra.mxu1 %v5161_v19 }
 0x32e   :  { %5034 = vmatprep.subr.bf16.mxu1 %v5162_v22 }
 0x331   :  { %5035 = vmatpush3.bf16.msra.mxu1 %v5163_v23 }
 0x332   :  { %5036 = vmatprep.subr.bf16.mxu1 %v5164_v30 }
 0x335   :  { %5037 = vmatpush3.bf16.msra.mxu1 %v5165_v31 }
 0x336   :  { %5038 = vmatprep.subr.bf16.mxu1 %v5166_v18 }
 0x339   :  { %5039 = vmatpush3.bf16.msra.mxu1 %v5167_v35 }
 0x33a   :  { %5084 = vmatprep.subr.bf16.mxu1 %v5276_v0 }
 0x36f   :  { %v3764_v26 = vpop.f32.mrb[12].mxu1 }
 0x370   :  { %v3766_v27 = vpop.f32.mrb[13].mxu1  ;;  %v4025_v43 = vmax.f32 %v3764_v26, 0.0 }
 0x371   :  { %v3768_v11 = vpop.f32.mrb[14].mxu1  ;;  %v4026_v46 = vmax.f32 %v3766_v27, 0.0 }
 0x372   :  { %v3769_v33 = vpop.f32.mrb[15].mxu1 }
 0x3ef   :  { %v3928_v42 = vpop.f32.mrb[16].mxu1 }
 0x3f0   :  { %v4029_v44 = vmax.f32 %v3928_v42, 0.0  ;;  %v3930_v45 = vpop.f32.mrb[17].mxu1 }
 0x3f1   :  { %v4030_v47 = vmax.f32 %v3930_v45, 0.0  ;;  %v3932_v48 = vpop.f32.mrb[18].mxu1 }
 0x3f2   :  { %v4037_v49 = vmax.f32 %v4025_v43, %v4029_v44  ;;  %v3933_v32 = vpop.f32.mrb[19].mxu1 }
 0x3f3   :  { %v4038_v51 = vmax.f32 %v4026_v46, %v4030_v47  ;;  %v5062_v58 = vpop.f32.mrb[20].mxu0 }
 0x3f4   :  { %v4041_v52 = vmax.f32 %v5593_v21, %v4037_v49  ;;  %v5063_v15 = vpop.f32.mrb[21].mxu0  ;;  %v4045_v21 = vpack.c.bf16 %v5172_v36, %v5172_v36 }
 0x3f5   :  { %v5064_v53 = vadd.f32 %v5063_v15, %v5062_v58  ;;  %v5065_v54 = vpop.f32.mrb[22].mxu0  ;;  %v4042_v28 = vmax.f32 %v5595_v25, %v4038_v51 }
 0x3f6   :  { %v5066_v55 = vpop.f32.mrb[23].mxu0  ;;  %v4046_v63 = vpack.c.bf16 %v4041_v52, %v4041_v52 }
 0x3f7   :  { %v4047_v57 = vpack.c.bf16 %v4042_v28, %v4042_v28 }
 0x3f9   :  { %4274 = vmatprep.mubr.bf16.mxu1 %v4047_v57 }
 0x3fa   :  { %4275 = vmatmul.mubr.bf16.vlgmr.msra.gmra.mrb[20].mxu1 %v4046_v63 }
 0x3fb   :  { %5085 = vmatpush3.bf16.msra.mxu1 %v5168_v62  ;;  %5086 = vmatprep.mubr.msk.bf16.mxu1 %vm5277_vm0, %v5276_v0 }
 0x402   :  { %5087 = vmatmul.mubr.msk.bf16.vlgmr.msra.gmra.mrb[24].mxu1 %vm206_vm10, %v4045_v21 }
 0x4cd   :  { %v5040_v4 = vpop.f32.mrb[20].mxu1 }
 0x4ce   :  { %v5041_v59 = vpop.f32.mrb[21].mxu1 }
 0x4cf   :  { %v5042_v25 = vadd.f32 %v5041_v59, %v5040_v4  ;;  %v5043_v60 = vpop.f32.mrb[22].mxu1 }
 0x4d0   :  { %v5044_v38 = vpop.f32.mrb[23].mxu1 }
 0x4d1   :  { %v4317_v61 = vadd.f32 %v5064_v53, %v5042_v25 }
 0x4d5   :  { %v4365_v1 = vpop.f32.mrb[24].mxu1 }
 0x4d6   :  { %v4366_v56 = vadd.f32 %v4365_v1, %v4317_v61  ;;  %v5088_v5 = vpop.f32.mrb[25].mxu1 }
 0x4d7   :  { %v4368_v12 = vpop.f32.mrb[26].mxu1 }
 0x4d8   :  { %v4374_v14 = vadd.f32 %v4372_v2, %v4366_v56  ;;  %v5089_v17 = vpop.f32.mrb[27].mxu1 }
 0x4da   :  { %v4376_v0 = vsel %vm4375_vm11, %v4374_v14, -inf }
 0x4db   :  { %4377 = vmax.xlane.f32.xlu1 %v4376_v0 }
 0x568   :  { %v4378_v20 = vpop.xlane.xlu1 %4377 }
 0x569   :  { %v4379_v6 = vsub.f32 %v4374_v14, %v4378_v20 }
 0x56b   :  { %v4380_v7 = vmul.f32 1.442695, %v4379_v6 }
 0x56d   :  { %5173 = vpow2.f32 %v4380_v7 }
 0x577   :  { %v5174_v8 = vpop.eup %5173 }
 0x578   :  { %v4382_v9 = vsel %vm4375_vm11, %v5174_v8, 0.0 }
 0x579   :  { %4383 = vadd.xlane.f32.xlu1 %v4382_v9 }
 0x606   :  { %v4384_v10 = vpop.xlane.xlu1 %4383 }
 0x607   :  { %5175 = vrcp.f32 %v4384_v10 }
 0x611   :  { %v5176_v29 = vpop.eup %5175 }
 0x612   :  { %v4386_v50 = vmul.f32 %v5176_v29, %v5174_v8 }
 0x614   :  { %4387 = vst.msk [vmem:[#allocation8] sm:$0x1] %vm4375_vm11, %v4386_v50 }
 0x615   :  { %5254 = shalt.err (!%p5251_p0)
}
 0x616   :  { %s5255_s26 = scalar_lea.hbm %s5683_s5, 16 }
 0x617   :  { %p5256_p1 = scmp.ne.s32.totalorder %s5683_s5, %s5255_s26  ;;  %p5259_p2 = scmp.lt.u32.totalorder %s5255_s26, %s5683_s5 }
 0x619   :  { %p5261_p3 = pnand %p5259_p2, %p5256_p1 }
 0x61b   :  { %5264 = shalt.err (!%p5261_p3)
}
 0x61c   :  { %4397 = dma.vmem_to_hbm [thread:$0]  %s4395_s21, 16, %s5683_s5, [#allocation4]  }
 0x61d   :  { %5269 = dma.done.wait [#allocation4], 16  }
 0x61e   :  { %5270 = vsyncadd [#allocation4], 4294967280 }
 0x61f   :  { %4401 = vsyncpa [#allocation3], 1 }
 0x620   :  { %4402 = vsyncpa [#allocation6], 1 }
 0x621   :  { %4403 = vsyncpa [#allocation4], 1 }

</bundles_post_ra>
